<compile_context>
chip_gen: v6e
topology: v6e:2x2x1
jax: 0.10.0
libtpu: 0.0.40
codegen_flags: <defaults>
</compile_context>

<pallas_src>
import functools

import numpy as np
import jax
import jax.numpy as jnp
from jax.experimental import pallas as pl
from jax.experimental.pallas import tpu as pltpu


def _round_up(x, m):
    return -(-x // m) * m


_VMEM_LIMIT = 64 * 1024 * 1024          # safe across v5e/v6e/v7x generations
_CONV_VMEM_BUDGET = 24 * 1024 * 1024    # target live footprint per conv tile


def _cparams(sem):
    return pltpu.CompilerParams(dimension_semantics=sem,
                                vmem_limit_bytes=_VMEM_LIMIT)


def _pick_tile(m, cap=1024):
    """Largest tile (multiple of 8, <= cap) that divides m; None if impossible."""
    for c in (2048, 1024, 512, 256, 128, 64, 32, 16, 8):
        if c <= cap and c <= m and m % c == 0:
            return c
    return None


# ---------------------------------------------------------------------------
# GEMM + bias (+ReLU)
# ---------------------------------------------------------------------------

def _matmul_bias_kernel(a_ref, b_ref, bias_ref, o_ref, *, relu):
    r = jnp.dot(a_ref[...], b_ref[...], preferred_element_type=jnp.float32)
    r = r + bias_ref[...]
    if relu:
        r = jnp.maximum(r, 0.0)
    o_ref[...] = r.astype(o_ref.dtype)


def pallas_matmul(a, b, bias, relu=False, out_dtype=jnp.bfloat16):
    """out = act(a @ b + bias); a:(M,K) b:(K,N) bias:(N,). K,N are full-dim blocks."""
    M, K = a.shape
    _, N = b.shape
    a = a.astype(jnp.bfloat16)
    b = b.astype(jnp.bfloat16)
    bias2 = bias.astype(jnp.float32).reshape(1, N)

    tm = _pick_tile(M, cap=1024)
    if tm is None:                      # tiny M (e.g. the batch-2 embedding linears)
        Mp = _round_up(M, 8)
        a = jnp.pad(a, ((0, Mp - M), (0, 0)))
        tm = Mp
    else:
        Mp = M

    out = pl.pallas_call(
        functools.partial(_matmul_bias_kernel, relu=relu),
        out_shape=jax.ShapeDtypeStruct((Mp, N), out_dtype),
        grid=(Mp // tm,),
        in_specs=[
            pl.BlockSpec((tm, K), lambda i: (i, 0)),
            pl.BlockSpec((K, N), lambda i: (0, 0)),
            pl.BlockSpec((1, N), lambda i: (0, 0)),
        ],
        out_specs=pl.BlockSpec((tm, N), lambda i: (i, 0)),
        compiler_params=_cparams(("parallel",)),
    )(a, b, bias2)
    return out[:M] if Mp != M else out


# ---------------------------------------------------------------------------
# Row-tiled grouped conv (3x3 / dilated), halo via two adjacent row blocks
# ---------------------------------------------------------------------------

def _conv_kernel(*refs, kh, kw, dil, out_rows, out_cols, cin, concat_taps,
                 relu, has_extra, two_blocks, halo):
    idx = 0
    x0_ref = refs[idx]; idx += 1
    x1_ref = None
    if two_blocks:
        x1_ref = refs[idx]; idx += 1
    w_ref = refs[idx]; idx += 1
    b_ref = refs[idx]; idx += 1
    e_ref = None
    if has_extra:
        e_ref = refs[idx]; idx += 1
    o_ref = refs[-1]

    # Assemble the halo'd window in VMEM (row tile + 2*ph halo rows).
    if two_blocks:
        win = jnp.concatenate([x0_ref[0, 0], x1_ref[0, 0, :halo]], axis=0)
    else:
        win = x0_ref[0, 0]

    m = out_rows * out_cols
    if concat_taps:
        # im2col-in-VMEM: one GEMM with K = kh*kw*cin (fills the MXU depth).
        cols = []
        for ki in range(kh):
            for kj in range(kw):
                patch = win[ki * dil:ki * dil + out_rows,
                            kj * dil:kj * dil + out_cols, :]
                cols.append(patch.reshape(m, cin))
        acc = jnp.dot(jnp.concatenate(cols, axis=-1), w_ref[0],
                      preferred_element_type=jnp.float32)
    else:
        acc = None
        t = 0
        for ki in range(kh):
            for kj in range(kw):
                patch = win[ki * dil:ki * dil + out_rows,
                            kj * dil:kj * dil + out_cols, :]
                d = jnp.dot(patch.reshape(m, cin), w_ref[0, t],
                            preferred_element_type=jnp.float32)
                acc = d if acc is None else acc + d
                t += 1

    acc = acc + b_ref[0]
    if relu:
        acc = jnp.maximum(acc, 0.0)
    if has_extra:
        # pos/cs embedding: added AFTER the activation (reference adds it to the
        # already-activated head output).
        acc = acc + e_ref[0]
    o_ref[0, 0] = acc.reshape(out_rows, out_cols, -1).astype(o_ref.dtype)


def conv2d(x, w, b, dilation=1, relu=False, extra=None, row_tile=None):
    """Grouped 'same'-padding conv, stride 1.
    x: (G, N, H, W, Cin); w: (G, kh, kw, Cin, Cout); b: (G, Cout).
    extra: optional (N, Cout) f32 added post-activation (fused embedding add)."""
    G, N, H, W, cin = x.shape
    _, kh, kw, _, cout = w.shape
    x = x.astype(jnp.bfloat16)

    if kh == 1 and kw == 1 and G == 1 and extra is None:
        out = pallas_matmul(x.reshape(N * H * W, cin), w.reshape(cin, cout),
                            b.reshape(cout), relu=relu)
        return out.reshape(G, N, H, W, cout)

    ph = dilation * (kh - 1) // 2
    pw = dilation * (kw - 1) // 2
    halo = 2 * ph
    Wp = W + 2 * pw
    taps = kh * kw
    concat_taps = cin < 128

    def vmem_need(rows):
        win = (rows + halo) * Wp * cin * 2
        im2col = rows * W * taps * cin * 2 if concat_taps else 0
        accb = rows * W * cout * 4
        outb = rows * W * cout * 2
        wb = taps * cin * cout * 2
        return 2 * win + im2col + accb + 2 * outb + wb

    if row_tile is not None:
        th = row_tile
        assert H % th == 0 and (th >= H or th >= max(halo, 1))
    else:
        cands = [H] + [d for d in (512, 256, 128, 64, 32, 16, 8)
                       if d < H and H % d == 0 and d >= max(halo, 8)]
        th = cands[-1]
        for c in cands:
            if vmem_need(c) <= _CONV_VMEM_BUDGET:
                th = c
                break
    tiled = th < H

    if tiled:
        # padded rows = [ph zeros][H data][th-ph zeros]; window i spans row-blocks i, i+1
        xp = jnp.pad(x, ((0, 0), (0, 0), (ph, th - ph), (pw, pw), (0, 0)))
    else:
        xp = jnp.pad(x, ((0, 0), (0, 0), (ph, ph), (pw, pw), (0, 0)))
    # TODO(synk): the halo zero-padding is still materialized in HBM; predicated
    # edge taps inside the kernel would remove this extra activation copy.

    if concat_taps:
        w_r = w.astype(jnp.bfloat16).reshape(G, taps * cin, cout)
        w_spec = pl.BlockSpec((1, taps * cin, cout), lambda g, n, i: (g, 0, 0))
    else:
        w_r = w.astype(jnp.bfloat16).reshape(G, taps, cin, cout)
        w_spec = pl.BlockSpec((1, taps, cin, cout), lambda g, n, i: (g, 0, 0, 0))
    b_r = b.astype(jnp.float32).reshape(G, 1, cout)

    rows0 = th if tiled else H + halo
    in_specs = [pl.BlockSpec((1, 1, rows0, Wp, cin), lambda g, n, i: (g, n, i, 0, 0))]
    ops = [xp]
    if tiled:
        in_specs.append(pl.BlockSpec((1, 1, th, Wp, cin),
                                     lambda g, n, i: (g, n, i + 1, 0, 0)))
        ops.append(xp)
    ops += [w_r, b_r]
    in_specs += [w_spec, pl.BlockSpec((1, 1, cout), lambda g, n, i: (g, 0, 0))]
    has_extra = extra is not None
    if has_extra:
        ops.append(extra.astype(jnp.float32).reshape(N, 1, cout))
        in_specs.append(pl.BlockSpec((1, 1, cout), lambda g, n, i: (n, 0, 0)))

    out = pl.pallas_call(
        functools.partial(_conv_kernel, kh=kh, kw=kw, dil=dilation,
                          out_rows=th, out_cols=W, cin=cin,
                          concat_taps=concat_taps, relu=relu,
                          has_extra=has_extra, two_blocks=tiled, halo=halo),
        out_shape=jax.ShapeDtypeStruct((G, N, H, W, cout), jnp.bfloat16),
        grid=(G, N, H // th),
        in_specs=in_specs,
        out_specs=pl.BlockSpec((1, 1, th, W, cout), lambda g, n, i: (g, n, i, 0, 0)),
        compiler_params=_cparams(("parallel", "parallel", "parallel")),
    )(*ops)
    return out


def conv_nhwc(x, w, b, **kw):
    """Single-group convenience wrapper: x (N,H,W,Cin), w (kh,kw,Cin,Cout)."""
    return conv2d(x[None], w[None], b[None], **kw)[0]


# ---------------------------------------------------------------------------
# Concat-free multi-input accumulating GEMM (fusion stages, ASPP projection)
# ---------------------------------------------------------------------------

def _multi_gemm_kernel(*refs, n_in, n_groups, relu, has_extra):
    xs = refs[:n_in]                       # each (1, tm, C)
    w_ref = refs[n_in]                     # (G, n_in, C, Cout)
    b_ref = refs[n_in + 1]                 # (G, 1, Cout)
    e_ref = refs[n_in + 2] if has_extra else None   # (1, 1, Cout)
    o_ref = refs[-1]                       # (G, tm, Cout)
    for g in range(n_groups):
        acc = jnp.dot(xs[0][0], w_ref[g, 0], preferred_element_type=jnp.float32)
        for s in range(1, n_in):
            acc = acc + jnp.dot(xs[s][0], w_ref[g, s],
                                preferred_element_type=jnp.float32)
        acc = acc + b_ref[g]
        if has_extra:               # pre-activation constant (ASPP pooled branch)
            acc = acc + e_ref[0]
        if relu:
            acc = jnp.maximum(acc, 0.0)
        o_ref[g] = acc.astype(o_ref.dtype)


def multi_gemm(branch_views, w, b, relu=True, extra=None, rows_per_batch=None,
               out_dtype=jnp.bfloat16):
    """out[g] = act(sum_s views[s] @ w[g, s] + b[g] [+ extra_per_batch]).
    branch_views: list of ((S, M, C) array, lead index) -- the channel concat of
    the reference model is replaced by a reduction over the input chunks, so no
    concatenated tensor is ever written to HBM."""
    arrs = [a.astype(jnp.bfloat16) for a, _ in branch_views]
    leads = [l for _, l in branch_views]
    n_in = len(arrs)
    M, C = arrs[0].shape[1], arrs[0].shape[2]
    G, _, _, Cout = w.shape

    tm = _pick_tile(rows_per_batch if extra is not None else M, cap=1024)
    assert tm is not None and M % tm == 0

    in_specs = [pl.BlockSpec((1, tm, C), lambda i, l=l: (l, i, 0)) for l in leads]
    in_specs.append(pl.BlockSpec((G, n_in, C, Cout), lambda i: (0, 0, 0, 0)))
    in_specs.append(pl.BlockSpec((G, 1, Cout), lambda i: (0, 0, 0)))
    ops = arrs + [w.astype(jnp.bfloat16),
                  b.astype(jnp.float32).reshape(G, 1, Cout)]
    has_extra = extra is not None
    if has_extra:
        rpb = rows_per_batch
        ops.append(extra.astype(jnp.float32).reshape(-1, 1, Cout))
        in_specs.append(pl.BlockSpec((1, 1, Cout),
                                     lambda i: ((i * tm) // rpb, 0, 0)))

    out = pl.pallas_call(
        functools.partial(_multi_gemm_kernel, n_in=n_in, n_groups=G,
                          relu=relu, has_extra=has_extra),
        out_shape=jax.ShapeDtypeStruct((G, M, Cout), out_dtype),
        grid=(M // tm,),
        in_specs=in_specs,
        out_specs=pl.BlockSpec((G, tm, Cout), lambda i: (0, i, 0)),
        compiler_params=_cparams(("parallel",)),
    )(*ops)
    return out


# ---------------------------------------------------------------------------
# Fused LastLayer (multi-input 1x1 GEMM + ReLU + 1-channel lane-reduction)
# ---------------------------------------------------------------------------

def _lastlayer_kernel(*refs, n_in):
    xs = refs[:n_in]                       # each (tm, C)
    w1_ref, b1_ref, w2_ref, b2_ref = refs[n_in:n_in + 4]
    o_ref = refs[-1]                       # (tm, 1)
    acc = jnp.dot(xs[0][...], w1_ref[0], preferred_element_type=jnp.float32)
    for s in range(1, n_in):
        acc = acc + jnp.dot(xs[s][...], w1_ref[s], preferred_element_type=jnp.float32)
    acc = jnp.maximum(acc + b1_ref[...], 0.0)
    # 1-channel projection as a VPU mul + lane reduction (no 1-wide MXU GEMM,
    # no HBM round trip of the intermediate).
    out = jnp.sum(acc * w2_ref[...], axis=-1, keepdims=True) + b2_ref[...]
    o_ref[...] = out.astype(o_ref.dtype)


def lastlayer_forward(p, xs):
    """xs: list of (N,H,W,C) tensors whose channel concat feeds LastLayer."""
    N, H, W, C = xs[0].shape
    M = N * H * W
    n_in = len(xs)
    Cmid = p["c1"]["w"].shape[-1]
    w1 = p["c1"]["w"].reshape(n_in, C, Cmid).astype(jnp.bfloat16)
    b1 = p["c1"]["b"].astype(jnp.float32).reshape(1, Cmid)
    w2 = p["c2"]["w"].astype(jnp.float32).reshape(1, Cmid)
    b2 = p["c2"]["b"].astype(jnp.float32).reshape(1, 1)

    tm = _pick_tile(M, cap=1024)
    assert tm is not None
    ops = [x.astype(jnp.bfloat16).reshape(M, C) for x in xs] + [w1, b1, w2, b2]
    in_specs = ([pl.BlockSpec((tm, C), lambda i: (i, 0)) for _ in xs] +
                [pl.BlockSpec((n_in, C, Cmid), lambda i: (0, 0, 0)),
                 pl.BlockSpec((1, Cmid), lambda i: (0, 0)),
                 pl.BlockSpec((1, Cmid), lambda i: (0, 0)),
                 pl.BlockSpec((1, 1), lambda i: (0, 0))])
    out = pl.pallas_call(
        functools.partial(_lastlayer_kernel, n_in=n_in),
        out_shape=jax.ShapeDtypeStruct((M, 1), jnp.float32),
        grid=(M // tm,),
        in_specs=in_specs,
        out_specs=pl.BlockSpec((tm, 1), lambda i: (i, 0)),
        compiler_params=_cparams(("parallel",)),
    )(*ops)
    return out.reshape(N, H, W, 1)


# ---------------------------------------------------------------------------
# Resize (kept in bf16)
# ---------------------------------------------------------------------------

def bilinear_resize(x, h, w):
    if x.shape[1] == h and x.shape[2] == w:
        return x
    # TODO(synk): half-pixel bilinear (jax.image.resize), not torch F.upsample
    # align_corners semantics; kept in bf16 to halve HBM traffic.
    y = jax.image.resize(x, (x.shape[0], h, w, x.shape[3]),
                         method="bilinear", antialias=False)
    return y.astype(x.dtype)


# ---------------------------------------------------------------------------
# Deterministic parameter construction (no checkpoint loading)
# ---------------------------------------------------------------------------

RESIZER_OUT = (8, 8)      # stands in for the (64, 64) target at small scale
FW = 128                  # num_channels * 2
N_CH = 64
STAGE1_OUT = 256          # num_channels * 4
DIL_RATES = (6, 12, 18)


def make_params(seed=0):
    root = jax.random.PRNGKey(seed)
    cnt = [0]

    def nk():
        cnt[0] += 1
        return jax.random.fold_in(root, cnt[0])

    def conv_p(kh, kw, cin, cout):
        w = jax.random.normal(nk(), (kh, kw, cin, cout), jnp.float32) / np.sqrt(kh * kw * cin)
        return {"w": w.astype(jnp.bfloat16), "b": jnp.zeros((cout,), jnp.float32)}

    def linear_p(fin, fout):
        w = jax.random.normal(nk(), (fin, fout), jnp.float32) / np.sqrt(fin)
        return {"w": w.astype(jnp.bfloat16), "b": jnp.zeros((fout,), jnp.float32)}

    def resizer_p(in_chs=4, nf=16, n_res=2):
        return {"c1": conv_p(3, 3, in_chs, nf),
                "res": [{"c1": conv_p(3, 3, nf, nf), "c2": conv_p(3, 3, nf, nf)}
                        for _ in range(n_res)],
                "c2": conv_p(3, 3, nf, in_chs)}

    def head_p(nc=N_CH, nb=4, fw=FW):
        return {"stem": conv_p(3, 3, 4, nc),
                "blocks": [{"c1": conv_p(3, 3, nc, nc), "c2": conv_p(3, 3, nc, nc)}
                           for _ in range(nb)],
                "out": conv_p(3, 3, nc, fw)}

    def aspp_p(cin, cout, rates):
        return {"b0": conv_p(1, 1, cin, cout),
                "dil": [conv_p(3, 3, cin, cout) for _ in rates],
                "gp": conv_p(1, 1, cin, cout),
                "proj": conv_p(1, 1, cout * (len(rates) + 2), cout)}

    def fusion_p(c):
        return [conv_p(1, 1, 3 * c, c) for _ in range(3)]

    def lastlayer_p(cin, ncls=1):
        return {"c1": conv_p(1, 1, cin, cin), "c2": conv_p(1, 1, cin, ncls)}

    return {
        "rz128": resizer_p(), "rz96": resizer_p(), "rz64": resizer_p(),
        "head1": head_p(), "head2": head_p(), "head3": head_p(),
        "embed_cs": linear_p(34, FW),
        "embed_pos_128": linear_p(144, FW),
        "embed_pos_96": linear_p(144, FW),
        "embed_pos_64": linear_p(144, FW),
        "pos_weight": jnp.array([0.1], jnp.float32),
        "cs_weight": jnp.array([0.1], jnp.float32),
        "aspp": [aspp_p(FW, STAGE1_OUT, DIL_RATES) for _ in range(3)],
        "stage1": fusion_p(STAGE1_OUT),
        "transition1": [conv_p(3, 3, STAGE1_OUT, 64) for _ in range(3)],
        "stage2": fusion_p(64),
        "transition2": [conv_p(3, 3, 64, 64) for _ in range(3)],
        "stage3": fusion_p(64),
        "transition3": [conv_p(3, 3, 64, 96) for _ in range(3)],
        "stage4": fusion_p(96),
        "last": lastlayer_p(96 * 3),
        "last1": lastlayer_p(96), "last2": lastlayer_p(96), "last3": lastlayer_p(96),
    }


# ---------------------------------------------------------------------------
# Submodule forwards (NHWC)
# ---------------------------------------------------------------------------

def resizer_forward(p, x):
    skip = bilinear_resize(x, *RESIZER_OUT)
    h = conv_nhwc(x, p["c1"]["w"], p["c1"]["b"], relu=True)
    h = bilinear_resize(h, *RESIZER_OUT)
    for rb in p["res"]:
        r = conv_nhwc(h, rb["c1"]["w"], rb["c1"]["b"], relu=True)
        r = conv_nhwc(r, rb["c2"]["w"], rb["c2"]["b"], relu=False)
        h = h + r
    h = conv_nhwc(h, p["c2"]["w"], p["c2"]["b"], relu=False)
    return h + skip


def head_forward(p, x, extra):
    h = conv_nhwc(x, p["stem"]["w"], p["stem"]["b"], relu=True)
    for rb in p["blocks"]:
        r = conv_nhwc(h, rb["c1"]["w"], rb["c1"]["b"], relu=True)
        r = conv_nhwc(r, rb["c2"]["w"], rb["c2"]["b"], relu=False)
        h = jnp.maximum(h + r, 0.0)
    # pos/cs embedding add fused into the (post-ReLU) epilogue of the out conv.
    return conv_nhwc(h, p["out"]["w"], p["out"]["b"], relu=True, extra=extra)


def aspp_forward(p, x):
    """x: (N,H,W,Cin) -> (1, N*H*W, Cout).  The 5-way channel concat is replaced
    by an accumulating GEMM over the 4 spatial branches; the pooled branch is a
    per-batch constant folded into the projection epilogue."""
    N, H, W, cin = x.shape
    M = N * H * W
    cout = p["b0"]["w"].shape[-1]

    b0 = pallas_matmul(x.reshape(M, cin), p["b0"]["w"].reshape(cin, cout),
                       p["b0"]["b"], relu=True)
    branches = [(b0.reshape(1, M, cout), 0)]
    for rate, pr in zip(DIL_RATES, p["dil"]):
        d = conv_nhwc(x, pr["w"], pr["b"], dilation=rate, relu=True)
        branches.append((d.reshape(1, M, cout), 0))

    gp = jnp.mean(x.astype(jnp.float32), axis=(1, 2))                     # (N, Cin)
    gp = pallas_matmul(gp, p["gp"]["w"].reshape(cin, cout), p["gp"]["b"], relu=True)

    wp = p["proj"]["w"].reshape(len(DIL_RATES) + 2, cout, cout)
    const = pallas_matmul(gp, wp[-1], jnp.zeros((cout,), jnp.float32),
                          out_dtype=jnp.float32)                          # (N, Cout)

    return multi_gemm(branches, wp[:4].reshape(1, 4, cout, cout),
                      p["proj"]["b"].reshape(1, cout),
                      relu=True, extra=const, rows_per_batch=H * W)


def fusion_stage(p, branch_views):
    """MultibranchFusion: each output branch = relu(1x1 conv over the channel
    concat of the 3 input branches).  One concat-free multi-input GEMM producing
    the branch-stacked (3, M, C) output."""
    n_in = len(branch_views)
    C = p[0]["w"].shape[-1]
    w = jnp.stack([pi["w"].reshape(n_in, C, C) for pi in p], axis=0)   # (3, 3, C, C)
    b = jnp.stack([pi["b"] for pi in p], axis=0)                       # (3, C)
    return multi_gemm(branch_views, w, b, relu=True)


def transition_stage(p_list, x_stacked, N, H, W):
    """Three stageblock 3x3 convs as ONE grouped pallas_call (branch grid axis)."""
    Cin = x_stacked.shape[-1]
    w = jnp.stack([pi["w"] for pi in p_list], axis=0)   # (3, 3, 3, Cin, Cout)
    b = jnp.stack([pi["b"] for pi in p_list], axis=0)   # (3, Cout)
    x5 = x_stacked.reshape(len(p_list), N, H, W, Cin)
    y = conv2d(x5, w, b, relu=True)                     # (3, N, H, W, Cout)
    return y.reshape(len(p_list), N * H * W, y.shape[-1])


# ---------------------------------------------------------------------------
# Full MultibranchNet forward
# ---------------------------------------------------------------------------

def multibranch_forward(params, x_list_nchw, pos_mess):
    x512, x256, x128 = [jnp.transpose(xx, (0, 2, 3, 1)).astype(jnp.bfloat16)
                        for xx in x_list_nchw]

    x1 = resizer_forward(params["rz128"], x512)
    x2 = resizer_forward(params["rz96"], x256)
    x3 = resizer_forward(params["rz64"], x128)

    # Embedding linears (pos64 embedding is computed-but-unused in the reference
    # forward -> skipped).
    pos128_e = pallas_matmul(pos_mess[0], params["embed_pos_128"]["w"],
                             params["embed_pos_128"]["b"], out_dtype=jnp.float32)
    pos96_e = pallas_matmul(pos_mess[1], params["embed_pos_96"]["w"],
                            params["embed_pos_96"]["b"], out_dtype=jnp.float32)
    cs_e = pallas_matmul(pos_mess[3], params["embed_cs"]["w"],
                         params["embed_cs"]["b"], out_dtype=jnp.float32)
    pw_, cw_ = params["pos_weight"], params["cs_weight"]
    extra1 = pw_ * pos128_e + cw_ * cs_e
    extra2 = pw_ * pos96_e + cw_ * cs_e
    extra3 = pw_ * pos96_e + cw_ * cs_e   # reference reuses pos96 for branch 3

    x1 = head_forward(params["head1"], x1, extra1)
    x2 = head_forward(params["head2"], x2, extra2)
    x3 = head_forward(params["head3"], x3, extra3)

    N, Ht, Wt = x1.shape[0], x1.shape[1], x1.shape[2]

    z_list = [aspp_forward(params["aspp"][i], xi)
              for i, xi in enumerate((x1, x2, x3))]          # each (1, M, 256)

    # Branch-stacked trunk: no split/concat HBM round trips.
    y = fusion_stage(params["stage1"], [(z_list[0], 0), (z_list[1], 0), (z_list[2], 0)])
    y = transition_stage(params["transition1"], y, N, Ht, Wt)
    y = fusion_stage(params["stage2"], [(y, 0), (y, 1), (y, 2)])
    y = transition_stage(params["transition2"], y, N, Ht, Wt)
    y = fusion_stage(params["stage3"], [(y, 0), (y, 1), (y, 2)])
    y = transition_stage(params["transition3"], y, N, Ht, Wt)
    y = fusion_stage(params["stage4"], [(y, 0), (y, 1), (y, 2)])
    xst = y.reshape(3, N, Ht, Wt, -1)

    y0 = bilinear_resize(xst[0], x512.shape[1], x512.shape[2])
    y1 = bilinear_resize(xst[1], x256.shape[1], x256.shape[2])
    y2 = bilinear_resize(xst[2], x128.shape[1], x128.shape[2])

    h128, w128 = x128.shape[1], x128.shape[2]

    def center_crop(t, h, w):
        H_, W_ = t.shape[1], t.shape[2]
        return t[:, H_ // 2 - h // 2:H_ // 2 + h // 2,
                 W_ // 2 - w // 2:W_ // 2 + w // 2, :]

    m0 = center_crop(y0, h128, w128)
    m1 = center_crop(y1, h128, w128)
    m2 = y2

    yy = lastlayer_forward(params["last"], [m0, m1, y2])
    y_0 = lastlayer_forward(params["last1"], [y0])
    y_1 = lastlayer_forward(params["last2"], [y1])
    y_2 = lastlayer_forward(params["last3"], [y2])

    to_nchw = lambda t: jnp.transpose(t.astype(jnp.float32), (0, 3, 1, 2))
    return tuple(to_nchw(t) for t in (y_0, y_1, y_2, yy, m0, m1, m2))


# ---------------------------------------------------------------------------
# Main
# ---------------------------------------------------------------------------

if __name__ == "__main__":
    key = jax.random.PRNGKey(0)
    ks = jax.random.split(key, 9)

    # Small stand-ins for the (512/256/128)-sized NCHW inputs.
    x_512 = jax.random.normal(ks[0], (2, 4, 16, 16), jnp.float32)
    x_256 = jax.random.normal(ks[1], (2, 4, 8, 8), jnp.float32)
    x_128 = jax.random.normal(ks[2], (2, 4, 4, 4), jnp.float32)
    pos_mess = [
        jax.random.normal(ks[3], (2, 144), jnp.float32),   # embed_pos_128 input (72*2)
        jax.random.normal(ks[4], (2, 144), jnp.float32),   # embed_pos_96 input
        jax.random.normal(ks[5], (2, 144), jnp.float32),   # embed_pos_64 input (unused)
        jax.random.normal(ks[6], (2, 34), jnp.float32),    # embed_cs input
    ]

    # Sanity check: the row-tiled two-block-halo conv path must match the
    # whole-image path (exercises both the tap-concat and per-tap variants,
    # which the toy forward alone would not tile).
    for c_in in (8, 128):
        kx = jax.random.fold_in(ks[7], c_in)
        kw_ = jax.random.fold_in(ks[8], c_in)
        xt = jax.random.normal(kx, (1, 2, 16, 16, c_in), jnp.float32).astype(jnp.bfloat16)
        wt = (jax.random.normal(kw_, (1, 3, 3, c_in, 32), jnp.float32)
              / np.sqrt(9 * c_in)).astype(jnp.bfloat16)
        bt = jnp.zeros((1, 32), jnp.float32)
        whole = conv2d(xt, wt, bt, relu=True)
        tiled = conv2d(xt, wt, bt, relu=True, row_tile=8)
        np.testing.assert_allclose(np.asarray(whole, dtype=np.float32),
                                   np.asarray(tiled, dtype=np.float32),
                                   rtol=2e-2, atol=2e-2)

    params = make_params(seed=0)
    forward = jax.jit(multibranch_forward)
    outs = forward(params, [x_512, x_256, x_128], pos_mess)
    outs = jax.block_until_ready(outs)

    expected = [(2, 1, 16, 16), (2, 1, 8, 8), (2, 1, 4, 4), (2, 1, 4, 4),
                (2, 96, 4, 4), (2, 96, 4, 4), (2, 96, 4, 4)]
    got = [tuple(o.shape) for o in outs]
    assert got == expected, got
    assert all(bool(jnp.all(jnp.isfinite(o.astype(jnp.float32)))) for o in outs)
    print("KERNEL_OK")
</pallas_src>

<mosaic_0001>
module attributes {stable_mosaic.version = 11 : i64} {
  func.func @_conv_kernel(%arg0: i32, %arg1: i32, %arg2: i32, %arg3: memref<1x1x18x18x8xbf16, #tpu.memory_space<vmem>>, %arg4: memref<1x72x32xbf16, #tpu.memory_space<vmem>>, %arg5: memref<1x1x32xf32, #tpu.memory_space<vmem>>, %arg6: memref<1x1x16x16x32xbf16, #tpu.memory_space<vmem>>) attributes {dimension_semantics = [#tpu.dimension_semantics<parallel>, #tpu.dimension_semantics<parallel>, #tpu.dimension_semantics<parallel>], iteration_bounds = array<i64: 1, 2, 1>, scalar_prefetch = 0 : i64, scratch_operands = 0 : i64, tpu.core_type = #tpu.core_type<tc>, window_params = [{transform_indices = @transform_0, window_bounds = array<i64: 1, 1, 18, 18, 8>}, {transform_indices = @transform_1, window_bounds = array<i64: 1, 72, 32>}, {transform_indices = @transform_2, window_bounds = array<i64: 1, 1, 32>}, {transform_indices = @transform_3, window_bounds = array<i64: 1, 1, 16, 16, 32>}]} {
    %c0 = arith.constant 0 : index
    %c0_0 = arith.constant 0 : index
    %c0_1 = arith.constant 0 : index
    %c0_2 = arith.constant 0 : index
    %c0_3 = arith.constant 0 : index
    %0 = vector.load %arg3[%c0, %c0_0, %c0_1, %c0_2, %c0_3] : memref<1x1x18x18x8xbf16, #tpu.memory_space<vmem>>, vector<1x1x18x18x8xbf16>
    %1 = vector.shape_cast %0 : vector<1x1x18x18x8xbf16> to vector<18x18x8xbf16>
    %2 = vector.extract_strided_slice %1 {offsets = [0, 0, 0], sizes = [16, 16, 8], strides = [1, 1, 1]} : vector<18x18x8xbf16> to vector<16x16x8xbf16>
    %3 = vector.shape_cast %2 : vector<16x16x8xbf16> to vector<256x8xbf16>
    %4 = vector.extract_strided_slice %1 {offsets = [0, 1, 0], sizes = [16, 16, 8], strides = [1, 1, 1]} : vector<18x18x8xbf16> to vector<16x16x8xbf16>
    %5 = vector.shape_cast %4 : vector<16x16x8xbf16> to vector<256x8xbf16>
    %6 = vector.extract_strided_slice %1 {offsets = [0, 2, 0], sizes = [16, 16, 8], strides = [1, 1, 1]} : vector<18x18x8xbf16> to vector<16x16x8xbf16>
    %7 = vector.shape_cast %6 : vector<16x16x8xbf16> to vector<256x8xbf16>
    %8 = vector.extract_strided_slice %1 {offsets = [1, 0, 0], sizes = [16, 16, 8], strides = [1, 1, 1]} : vector<18x18x8xbf16> to vector<16x16x8xbf16>
    %9 = vector.shape_cast %8 : vector<16x16x8xbf16> to vector<256x8xbf16>
    %10 = vector.extract_strided_slice %1 {offsets = [1, 1, 0], sizes = [16, 16, 8], strides = [1, 1, 1]} : vector<18x18x8xbf16> to vector<16x16x8xbf16>
    %11 = vector.shape_cast %10 : vector<16x16x8xbf16> to vector<256x8xbf16>
    %12 = vector.extract_strided_slice %1 {offsets = [1, 2, 0], sizes = [16, 16, 8], strides = [1, 1, 1]} : vector<18x18x8xbf16> to vector<16x16x8xbf16>
    %13 = vector.shape_cast %12 : vector<16x16x8xbf16> to vector<256x8xbf16>
    %14 = vector.extract_strided_slice %1 {offsets = [2, 0, 0], sizes = [16, 16, 8], strides = [1, 1, 1]} : vector<18x18x8xbf16> to vector<16x16x8xbf16>
    %15 = vector.shape_cast %14 : vector<16x16x8xbf16> to vector<256x8xbf16>
    %16 = vector.extract_strided_slice %1 {offsets = [2, 1, 0], sizes = [16, 16, 8], strides = [1, 1, 1]} : vector<18x18x8xbf16> to vector<16x16x8xbf16>
    %17 = vector.shape_cast %16 : vector<16x16x8xbf16> to vector<256x8xbf16>
    %18 = vector.extract_strided_slice %1 {offsets = [2, 2, 0], sizes = [16, 16, 8], strides = [1, 1, 1]} : vector<18x18x8xbf16> to vector<16x16x8xbf16>
    %19 = vector.shape_cast %18 : vector<16x16x8xbf16> to vector<256x8xbf16>
    %20 = tpu.concatenate %3, %5, %7, %9, %11, %13, %15, %17, %19 in 1 : vector<256x8xbf16>, vector<256x8xbf16>, vector<256x8xbf16>, vector<256x8xbf16>, vector<256x8xbf16>, vector<256x8xbf16>, vector<256x8xbf16>, vector<256x8xbf16>, vector<256x8xbf16> -> vector<256x72xbf16>
    %c0_4 = arith.constant 0 : index
    %c0_5 = arith.constant 0 : index
    %c0_6 = arith.constant 0 : index
    %21 = vector.load %arg4[%c0_4, %c0_5, %c0_6] : memref<1x72x32xbf16, #tpu.memory_space<vmem>>, vector<1x72x32xbf16>
    %22 = vector.shape_cast %21 : vector<1x72x32xbf16> to vector<72x32xbf16>
    %cst = arith.constant dense<0.000000e+00> : vector<256x32xf32>
    %23 = tpu.matmul %20, %22, %cst {dimension_numbers = #tpu.dot_dimension_numbers<[1], [0], [0], [1], [0, 0, 1, 1], [], []>} : vector<256x72xbf16>, vector<72x32xbf16>, vector<256x32xf32> -> vector<256x32xf32>
    %c0_7 = arith.constant 0 : index
    %c0_8 = arith.constant 0 : index
    %c0_9 = arith.constant 0 : index
    %24 = vector.load %arg5[%c0_7, %c0_8, %c0_9] : memref<1x1x32xf32, #tpu.memory_space<vmem>>, vector<1x1x32xf32>
    %25 = vector.shape_cast %24 : vector<1x1x32xf32> to vector<1x32xf32>
    %26 = vector.broadcast %25 : vector<1x32xf32> to vector<256x32xf32>
    %27 = arith.addf %23, %26 : vector<256x32xf32>
    %cst_10 = arith.constant 0.000000e+00 : f32
    %28 = vector.broadcast %cst_10 : f32 to vector<256x32xf32>
    %29 = arith.maximumf %27, %28 : vector<256x32xf32>
    %30 = vector.shape_cast %29 : vector<256x32xf32> to vector<16x16x32xf32>
    %31 = arith.truncf %30 : vector<16x16x32xf32> to vector<16x16x32xbf16>
    %c0_11 = arith.constant 0 : index
    %c0_12 = arith.constant 0 : index
    %c0_13 = arith.constant 0 : index
    %c0_14 = arith.constant 0 : index
    %c0_15 = arith.constant 0 : index
    %32 = vector.load %arg6[%c0_11, %c0_12, %c0_13, %c0_14, %c0_15] : memref<1x1x16x16x32xbf16, #tpu.memory_space<vmem>>, vector<1x1x16x16x32xbf16>
    %33 = vector.shape_cast %32 : vector<1x1x16x16x32xbf16> to vector<16x16x32xbf16>
    %34 = vector.shape_cast %31 : vector<16x16x32xbf16> to vector<1x1x16x16x32xbf16>
    tpu.vector_store %arg6[%c0_11, %c0_12, %c0_13, %c0_14, %c0_15], %34 {strides = array<i32>} : memref<1x1x16x16x32xbf16, #tpu.memory_space<vmem>>, vector<1x1x16x16x32xbf16>,
    return
  }
  func.func @transform_0(%arg0: i32, %arg1: i32, %arg2: i32) -> (i32, i32, i32, i32, i32) {
    %c0_i32 = arith.constant 0 : i32
    %c0_i32_0 = arith.constant 0 : i32
    %c0_i32_1 = arith.constant 0 : i32
    return %arg0, %arg1, %arg2, %c0_i32, %c0_i32_0 : i32, i32, i32, i32, i32
  }
  func.func @transform_1(%arg0: i32, %arg1: i32, %arg2: i32) -> (i32, i32, i32) {
    %c0_i32 = arith.constant 0 : i32
    %c0_i32_0 = arith.constant 0 : i32
    %c0_i32_1 = arith.constant 0 : i32
    return %arg0, %c0_i32, %c0_i32_0 : i32, i32, i32
  }
  func.func @transform_2(%arg0: i32, %arg1: i32, %arg2: i32) -> (i32, i32, i32) {
    %c0_i32 = arith.constant 0 : i32
    %c0_i32_0 = arith.constant 0 : i32
    %c0_i32_1 = arith.constant 0 : i32
    return %arg0, %c0_i32, %c0_i32_0 : i32, i32, i32
  }
  func.func @transform_3(%arg0: i32, %arg1: i32, %arg2: i32) -> (i32, i32, i32, i32, i32) {
    %c0_i32 = arith.constant 0 : i32
    %c0_i32_0 = arith.constant 0 : i32
    %c0_i32_1 = arith.constant 0 : i32
    return %arg0, %arg1, %arg2, %c0_i32, %c0_i32_0 : i32, i32, i32, i32, i32
  }
}

</mosaic_0001>

<bundles_post_ra>
// kernel: tpu_custom_call.1
= control target key start
LH: loop header
LB: loop body
LE: loop exit
PB: predicated region body
PF: predicated region fallthrough
CT: control target
= control target key end

     0   :  { %8 = vsyncpa [#allocation3], 0  ;;  %s3974_s0 = inlined_call_operand.vmem [shape: bf16[1,2,18,18,8], index: 0, kind: input, shape index: {}]   ;;  %s3975_s1 = inlined_call_operand.vmem [shape: bf16[1,72,32], index: 1, kind: input, shape index: {}]   ;;  %s3976_s2 = inlined_call_operand.vmem [shape: f32[1,1,32], index: 2, kind: input, shape index: {}]   ;;  %s3977_s3 = inlined_call_operand.hbm [shape: bf16[1,2,16,16,32], index: 3, kind: output, shape index: {}]  }
   0x1   :  { %10 = vsyncpa [#allocation3 + $0x1], 0  ;;  %s2648_s12 = smov 0   ;;  %s2650_s13 = smov 0  }
   0x2   :  { %s2652_s14 = smov 0   ;;  %s2654_s15 = smov 0  }
   0x3   :  { %s2656_s16 = smov 0   ;;  %s2658_s17 = smov 0  }
   0x4 LB: > { %s2204_s18 = sadd.s32 4294967295, %s2616_s17   ;;  %s2205_s19 = sadd.s32 4294967294, %s2616_s17   ;;  %s2616_s17 = sphi %s2658_s17, %s16_s17   ;;  %s2612_s16 = sphi %s2656_s16, %s4009_s16   ;;  %s2608_s15 = sphi %s2654_s15, %s4008_s15   ;;  %s2604_s14 = sphi %s2652_s14, %s4007_s14   ;;  %s2600_s13 = sphi %s2650_s13, %s4006_s13   ;;  %s2596_s12 = sphi %s2648_s12, %s4005_s12  }
   0x5   : > { %s31_s20 = sadd.s32 1, %s2612_s16  ;;  %s128_s21 = sadd.s32 1, %s2604_s14 }
   0x6   : > { %p33_p0 = scmp.ge.s32.totalorder %s31_s20, 2  ;;  %p138_p1 = scmp.ne.s32.totalorder %s2604_s14, %s2600_s13 }
   0x7   : > { %p139_p2 = scmp.eq.s32.totalorder %s2204_s18, 1  ;;  %p144_p3 = scmp.ne.s32.totalorder %s2600_s13, %s2596_s12 }
   0x8   : > { %s4011_s20 = smov (%p33_p0, %s31_s20), 0  ;;  %p145_p5 = scmp.eq.s32.totalorder %s2205_s19, 1 }
   0x9   : > { %p2688_p4 = por %p139_p2, %p138_p1  ;;  %s122_s23 = ssub.s32 %s2612_s16, %s4011_s20 }
   0xa   : > { %p2210_p6 = scmp.ge.s32.totalorder %s2616_s17, 1  ;;  %p126_p7 = scmp.eq.s32.totalorder %s122_s23, 0 }
   0xb   : > { %p2695_p8 = por %p145_p5, %p144_p3  ;;  %p195_p9 = scmp.lt.s32.totalorder %s2616_s17, 3 }
   0xc   : > { %s2701_s25 = scalar_select %p126_p7, %s2604_s14, %s128_s21  }
   0xd   : > { %p196_p10 = pnand %p2210_p6, %p195_p9 }
   0xf   : > { %199 = sbr.rel (%p196_p10) target bundleno = 632 (0x278), region = 32 }
  0x14   : > { %p239_p11 = scmp.lt.s32.totalorder %s2608_s15, 1  ;;  %vm750_vm0 = vcmask 1042432   ;;  %vm751_vm1 = vcmask 1046532   ;;  %vm315_vm2 = vsmask.f32 3328  ;;  %s2618_s4 = smov 24  }
  0x15   : > { %vm316_vm3 = vsmask.f32 7440  ;;  %vm2740_vm4 = vmor %vm750_vm0, %vm751_vm1  ;;  %s2619_s5 = smov 16   ;;  %s2620_s6 = smov 8   ;;  %vm1707_vm6 = vcmask 1043456   ;;  %vm1351_vm7 = vcmask 64512  }
  0x16   : > { %s240_s26 = scalar_select %p239_p11, %s2608_s15, 1  ;;  %vm2785_vm5 = vmor %vm315_vm2, %vm316_vm3  ;;  %vm1400_vm8 = vcmask 130048   ;;  %vm1433_vm9 = vcmask 195584   ;;  %vm1466_vm10 = vcmask 261120   ;;  %vm1499_vm11 = vcmask 326656  }
  0x17   : > { %s2621_s7 = smov 32   ;;  %s2622_s8 = smov 40   ;;  %vm1532_vm12 = vcmask 392192   ;;  %vm1565_vm13 = vcmask 457728   ;;  %vm1598_vm14 = vcmask 523264   ;;  %vm1674_vm15 = vcmask 588800  }
  0x18   : > { %s2452_s27 = smul.u32 216, %s240_s26  ;;  %s2623_s9 = smov 48   ;;  %vm2032_vm0 = vcmask 257024  }
  0x19   : > { %s2624_s10 = smov 56   ;;  %s2625_s11 = smov 64  }
  0x1a   : > { %s2708_s30 = scalar_lea.vmem %s3974_s0, %s2452_s27  ;;  %s2626_s27 = smov [#allocation2]  }
  0x1b   : > { %v2711_v0 = vld [vmem:[%s2708_s30 + $0x6c] sm:$0xf]  ;;  %v2714_v1 = vld [vmem:[%s2708_s30 + $0x70] sm:$0xf]  ;;  %v2728_v12 = vld [vmem:[%s2708_s30 + $0x60] sm:$0xf] }
  0x1c   : > { %v264_v2 = vld [vmem:[%s2708_s30 + $0xc] sm:$0xf]  ;;  %v548_v3 = vshrl.u32 %v2714_v1, 16  ;;  %v2720_v4 = vcombine.low %v2711_v0, %v2714_v1  ;;  %v535_v5 = vshrl.u32 %v2711_v0, 16  ;;  %v538_v6 = vshll.u32 %v2711_v0, 16  ;;  %s2544_s28 = sshll.u32 %s2626_s27, 4  ;;  %s2545_s28 = int_to_ptr.vmem [resolvable:$false] %s2544_s28 }
  0x1d   : > { %v265_v7 = vld [vmem:[%s2708_s30 + $0x10] sm:$0xf]  ;;  %v343_v11 = vshrl.u32 %v264_v2, 16  ;;  %v346_v13 = vshll.u32 %v264_v2, 16  ;;  %v2733_v14 = vld [vmem:[%s2708_s30 + $0x64] sm:$0xf] }
  0x1e   : > { %v352_v8 = vshll.u32 %v265_v7, 16  ;;  %v356_v9 = vshrl.u32 %v265_v7, 16  ;;  %v2725_v10 = vcombine.low %v264_v2, %v265_v7  ;;  %1160 = vrot.lane.b32.xlu1 %v2720_v4, %s2618_s4  ;;  %v2736_v15 = vld [vmem:[%s2708_s30 + $0x68] sm:$0x1]  ;;  %v2221_v17 = vrot.slane %v2728_v12, 9  ;;  %s2546_s29 = scalar_lea.vmem %s2545_s28, 4096 }
  0x1f   : > { %v345_v19 = vrot.slane %v343_v11, 4  ;;  %v811_v20 = vrot.slane %v2733_v14, 5  ;;  %v814_v21 = vrot.slane %v2736_v15, 5  ;;  %v2750_v22 = vld [vmem:[%s2708_s30] sm:$0xf]  ;;  %v348_v23 = vrot.slane %v346_v13, 5 }
  0x20   : > { %v358_v18 = vrot.slane %v356_v9, 4  ;;  %1144 = vrot.lane.b32.xlu0 %v2725_v10, %s2618_s4  ;;  %v2753_v24 = vld [vmem:[%s2708_s30 + $0x4] sm:$0xf]  ;;  %v263_v25 = vld [vmem:[%s2708_s30 + $0x8] sm:$0x1]  ;;  %v2213_v26 = vrot.slane %v2750_v22, 9 }
  0x21   : > { %v812_v27 = vsel %vm2740_vm4, %v2221_v17, %v811_v20  ;;  %v813_v28 = vrot.slane %v811_v20, 4  ;;  %v755_v29 = vrot.slane %v2753_v24, 5  ;;  %v758_v30 = vrot.slane %v263_v25, 5  ;;  %v2761_v31 = vld [vmem:[%s2708_s30 + $0x74] sm:$0x1] }
  0x22   : > { %v2222_v32 = vrot.slane %v2711_v0, 9  ;;  %v818_v33 = vrot.slane %v2714_v1, 5  ;;  %v821_v34 = vrot.slane %v2761_v31, 5  ;;  %v266_v35 = vld [vmem:[%s2708_s30 + $0x14] sm:$0x1]  ;;  %v2214_v36 = vrot.slane %v264_v2, 9 }
  0x23   : > { %v815_v37 = vsel %vm2740_vm4, %v813_v28, %v814_v21  ;;  %v756_v38 = vsel %vm2740_vm4, %v2213_v26, %v755_v29  ;;  %v757_v39 = vrot.slane %v755_v29, 4  ;;  %v762_v40 = vrot.slane %v265_v7, 5 }
  0x24   : > { %v2771_v41 = vcombine.low %v812_v27, %v815_v37  ;;  %v819_v42 = vsel %vm2740_vm4, %v2222_v32, %v818_v33  ;;  %v820_v43 = vrot.slane %v818_v33, 4  ;;  %v765_v44 = vrot.slane %v266_v35, 5 }
  0x25   : > { %v759_v45 = vsel %vm2740_vm4, %v757_v39, %v758_v30  ;;  %v763_v46 = vsel %vm2740_vm4, %v2214_v36, %v762_v40  ;;  %v764_v47 = vrot.slane %v762_v40, 4  ;;  %v349_v48 = vor.u32 %v348_v23, %v345_v19  ;;  %v2829_v39 = vld [vmem:[%s2708_s30 + $0x7c] sm:$0xf] }
  0x26   : > { %1125 = vrot.lane.b32.xlu1 %v2771_v41, %s2619_s5  ;;  %v2263_v49 = vcombine.low %v756_v38, %v759_v45  ;;  %v822_v50 = vsel %vm2740_vm4, %v820_v43, %v821_v34  ;;  %v354_v52 = vrot.slane %v352_v8, 5  ;;  %v362_v53 = vshll.u32 %v266_v35, 16  ;;  %v2824_v35 = vld [vmem:[%s2708_s30 + $0x78] sm:$0xf] }
  0x27   : > { %v2789_v54 = vcombine.low %v819_v42, %v822_v50  ;;  %v766_v55 = vsel %vm2740_vm4, %v764_v47, %v765_v44  ;;  %v350_v56 = vrot.slane %v349_v48, 4  ;;  %v319_v57 = vshrl.u32 %v2750_v22, 16  ;;  %v2841_v50 = vld [vmem:[%s2708_s30 + $0x1c] sm:$0xf] }
  0x28   : > { %1109 = vrot.lane.b32.xlu0 %v2263_v49, %s2619_s5  ;;  %v2795_v58 = vcombine.low %v763_v46, %v766_v55  ;;  %v359_v59 = vor.u32 %v358_v18, %v354_v52  ;;  %v364_v60 = vrot.slane %v362_v53, 5  ;;  %v322_v61 = vshll.u32 %v2750_v22, 16  ;;  %v2838_v49 = vld [vmem:[%s2708_s30 + $0x18] sm:$0xf] }
  0x29   : > { %3991 = vst [vmem:[#allocation5_spill] sm:$0xff] %v2789_v54  ;;  %v355_v62 = vsel %vm2785_vm5, %v350_v56, %v354_v52  ;;  %v321_v63 = vrot.slane %v319_v57, 4  ;;  %v328_v2 = vshll.u32 %v2753_v24, 16  ;;  %v332_v7 = vshrl.u32 %v2753_v24, 16 }
  0x2a   : > { %1127 = vrot.lane.b32.xlu1 %v2789_v54, %s2619_s5  ;;  %v360_v8 = vrot.slane %v359_v59, 4  ;;  %v324_v9 = vrot.slane %v322_v61, 5  ;;  %v338_v11 = vshll.u32 %v263_v25, 16  ;;  %v537_v13 = vrot.slane %v535_v5, 4 }
  0x2b   : > { %v330_v17 = vrot.slane %v328_v2, 5  ;;  %v334_v18 = vrot.slane %v332_v7, 4  ;;  %v540_v19 = vrot.slane %v538_v6, 5  ;;  %v544_v20 = vshll.u32 %v2714_v1, 16 }
  0x2c   : > { %1111 = vrot.lane.b32.xlu0 %v2795_v58, %s2619_s5  ;;  %v365_v21 = vsel %vm2785_vm5, %v360_v8, %v364_v60  ;;  %v325_v23 = vor.u32 %v324_v9, %v321_v63  ;;  %v340_v26 = vrot.slane %v338_v11, 5  ;;  %v550_v25 = vrot.slane %v548_v3, 4  ;;  %v293_v60 = vld [vmem:[%s2708_s30 + $0x80] sm:$0x1] }
  0x2d   : > { %v2815_v5 = vcombine.low %v355_v62, %v365_v21  ;;  %v335_v27 = vor.u32 %v334_v18, %v330_v17  ;;  %v541_v28 = vor.u32 %v540_v19, %v537_v13  ;;  %v546_v0 = vrot.slane %v544_v20, 5  ;;  %v2865_v20 = vld [vmem:[%s2708_s30 + $0x20] sm:$0x1] }
  0x2e   : > { %v326_v6 = vrot.slane %v325_v23, 4  ;;  %v554_v29 = vshll.u32 %v2761_v31, 16  ;;  %v511_v30 = vshrl.u32 %v2728_v12, 16  ;;  %v514_v32 = vshll.u32 %v2728_v12, 16 }
  0x2f   : > { %1031 = vrot.lane.b32.xlu1 %v2815_v5, %s2620_s6  ;;  %v336_v1 = vrot.slane %v335_v27, 4  ;;  %v542_v33 = vrot.slane %v541_v28, 4  ;;  %v551_v3 = vor.u32 %v550_v25, %v546_v0  ;;  %v520_v34 = vshll.u32 %v2733_v14, 16 }
  0x30   : > { %v331_v31 = vsel %vm2785_vm5, %v326_v6, %v330_v17  ;;  %v556_v36 = vrot.slane %v554_v29, 5  ;;  %v513_v37 = vrot.slane %v511_v30, 4  ;;  %v516_v38 = vrot.slane %v514_v32, 5 }
  0x31   : > { %v341_v40 = vsel %vm2785_vm5, %v336_v1, %v340_v26  ;;  %v547_v42 = vsel %vm2785_vm5, %v542_v33, %v546_v0  ;;  %v552_v43 = vrot.slane %v551_v3, 4  ;;  %v522_v44 = vrot.slane %v520_v34, 5 }
  0x32   : > { %v2247_v45 = vcombine.low %v331_v31, %v341_v40  ;;  %v517_v46 = vor.u32 %v516_v38, %v513_v37  ;;  %v524_v47 = vshrl.u32 %v2733_v14, 16  ;;  %v530_v48 = vshll.u32 %v2736_v15, 16 }
  0x33   : > { %v557_v52 = vsel %vm2785_vm5, %v552_v43, %v556_v36  ;;  %v559_v53 = vshrl.u32 %v2824_v35, 16  ;;  %v562_v55 = vshll.u32 %v2824_v35, 16  ;;  %v572_v56 = vshrl.u32 %v2829_v39, 16 }
  0x34   : > { %1029 = vrot.lane.b32.xlu0 %v2247_v45, %s2620_s6  ;;  %v2849_v57 = vcombine.low %v547_v42, %v557_v52  ;;  %v518_v59 = vrot.slane %v517_v46, 4  ;;  %v526_v15 = vrot.slane %v524_v47, 4  ;;  %v532_v61 = vrot.slane %v530_v48, 5  ;;  %v2892_v52 = vld [vmem:[%s2708_s30 + $0x84] sm:$0xf] }
  0x35   : > { %v367_v62 = vshrl.u32 %v2838_v49, 16  ;;  %v370_v63 = vshll.u32 %v2838_v49, 16  ;;  %v380_v2 = vshrl.u32 %v2841_v50, 16  ;;  %v2861_v9 = vcombine.low %v2824_v35, %v2829_v39 }
  0x36   : > { %3992 = vst [vmem:[#allocation6_spill] sm:$0xff] %v2849_v57  ;;  %1047 = vrot.lane.b32.xlu1 %v2849_v57, %s2620_s6  ;;  %v523_v7 = vsel %vm2785_vm5, %v518_v59, %v522_v44  ;;  %v527_v8 = vor.u32 %v526_v15, %v522_v44  ;;  %v561_v11 = vrot.slane %v559_v53, 4  ;;  %v564_v13 = vrot.slane %v562_v55, 5  ;;  %v2895_v53 = vld [vmem:[%s2708_s30 + $0x88] sm:$0xf] }
  0x37   : > { %v568_v17 = vshll.u32 %v2829_v39, 16  ;;  %v574_v18 = vrot.slane %v572_v56, 4  ;;  %v578_v19 = vshll.u32 %v293_v60, 16  ;;  %v369_v23 = vrot.slane %v367_v62, 4 }
  0x38   : > { %v528_v21 = vrot.slane %v527_v8, 4  ;;  %v372_v26 = vrot.slane %v370_v63, 5  ;;  %v376_v25 = vshll.u32 %v2841_v50, 16  ;;  %v565_v27 = vor.u32 %v564_v13, %v561_v11  ;;  %v2925_v13 = vld [vmem:[%s2708_s30 + $0x24] sm:$0xf] }
  0x39   : > { %v570_v28 = vrot.slane %v568_v17, 5  ;;  %v382_v0 = vrot.slane %v380_v2, 4  ;;  %v386_v32 = vshll.u32 %v2865_v20, 16  ;;  %v580_v34 = vrot.slane %v578_v19, 5  ;;  %v2928_v17 = vld [vmem:[%s2708_s30 + $0x28] sm:$0xf] }
  0x3a   : > { %v533_v6 = vsel %vm2785_vm5, %v528_v21, %v532_v61  ;;  %1162 = vrot.lane.b32.xlu1 %v2861_v9, %s2618_s4  ;;  %v373_v29 = vor.u32 %v372_v26, %v369_v23  ;;  %v378_v30 = vrot.slane %v376_v25, 5  ;;  %v566_v33 = vrot.slane %v565_v27, 4  ;;  %v296_v23 = vld [vmem:[%s2708_s30 + $0x8c] sm:$0x1] }
  0x3b   : > { %v2873_v1 = vcombine.low %v523_v7, %v533_v6  ;;  %v575_v3 = vor.u32 %v574_v18, %v570_v28  ;;  %v825_v36 = vrot.slane %v2829_v39, 5  ;;  %v2880_v37 = vcombine.low %v2838_v49, %v2841_v50 }
  0x3c   : > { %v383_v31 = vor.u32 %v382_v0, %v378_v30  ;;  %v571_v38 = vsel %vm2785_vm5, %v566_v33, %v570_v28  ;;  %v374_v42 = vrot.slane %v373_v29, 4  ;;  %v388_v44 = vrot.slane %v386_v32, 5 }
  0x3d   : > { %1045 = vrot.lane.b32.xlu0 %v2873_v1, %s2620_s6  ;;  %v576_v40 = vrot.slane %v575_v3, 4  ;;  %v2223_v39 = vrot.slane %v2824_v35, 9  ;;  %v827_v46 = vrot.slane %v825_v36, 4  ;;  %v828_v47 = vrot.slane %v293_v60, 5 }
  0x3e   : > { %1195 = vrot.lane.b32.xlu1 %v2849_v57, %s2621_s7  ;;  %v384_v43 = vrot.slane %v383_v31, 4  ;;  %v379_v35 = vsel %vm2785_vm5, %v374_v42, %v378_v30  ;;  %v769_v59 = vrot.slane %v2841_v50, 5  ;;  %v583_v60 = vshrl.u32 %v2892_v52, 16  ;;  %v272_v42 = vld [vmem:[%s2708_s30 + $0x2c] sm:$0x1] }
  0x3f   : > { %v581_v45 = vsel %vm2785_vm5, %v576_v40, %v580_v34  ;;  %v826_v56 = vsel %vm2740_vm4, %v2223_v39, %v825_v36  ;;  %v829_v15 = vsel %vm2740_vm4, %v827_v46, %v828_v47  ;;  %v586_v61 = vshll.u32 %v2892_v52, 16 }
  0x40   : > { %v2889_v48 = vcombine.low %v571_v38, %v581_v45  ;;  %v389_v55 = vsel %vm2785_vm5, %v384_v43, %v388_v44  ;;  %v596_v62 = vshrl.u32 %v2895_v53, 16  ;;  %v592_v63 = vshll.u32 %v2895_v53, 16 }
  0x41   : > { %1146 = vrot.lane.b32.xlu0 %v2880_v37, %s2618_s4  ;;  %v2916_v2 = vcombine.low %v379_v35, %v389_v55  ;;  %v2215_v7 = vrot.slane %v2838_v49, 9  ;;  %v2921_v50 = vcombine.low %v826_v56, %v829_v15  ;;  %v771_v8 = vrot.slane %v769_v59, 4 }
  0x42   : > { %1197 = vrot.lane.b32.xlu1 %v2889_v48, %s2621_s7  ;;  %v772_v11 = vrot.slane %v2865_v20, 5  ;;  %v585_v18 = vrot.slane %v583_v60, 4  ;;  %v588_v19 = vrot.slane %v586_v61, 5  ;;  %v598_v21 = vrot.slane %v596_v62, 4 }
  0x43   : > { %v770_v49 = vsel %vm2740_vm4, %v2215_v7, %v769_v59  ;;  %v391_v26 = vshrl.u32 %v2925_v13, 16  ;;  %v394_v25 = vshll.u32 %v2925_v13, 16  ;;  %v404_v27 = vshrl.u32 %v2928_v17, 16 }
  0x44   : > { %v773_v20 = vsel %vm2740_vm4, %v771_v8, %v772_v11  ;;  %v400_v28 = vshll.u32 %v2928_v17, 16  ;;  %v589_v0 = vor.u32 %v588_v19, %v585_v18  ;;  %v602_v29 = vshll.u32 %v296_v23, 16 }
  0x45   : > { %1179 = vrot.lane.b32.xlu0 %v2815_v5, %s2621_s7  ;;  %v594_v5 = vrot.slane %v592_v63, 5  ;;  %v2945_v30 = vcombine.low %v770_v49, %v773_v20  ;;  %v2949_v32 = vcombine.low %v2892_v52, %v2895_v53  ;;  %v393_v33 = vrot.slane %v391_v26, 4 }
  0x46   : > { %1230 = vrot.lane.b32.xlu1 %v2789_v54, %s2622_s8  ;;  %v396_v3 = vrot.slane %v394_v25, 5  ;;  %v402_v34 = vrot.slane %v400_v28, 5  ;;  %v406_v31 = vrot.slane %v404_v27, 4  ;;  %v590_v36 = vrot.slane %v589_v0, 4  ;;  %v2531_v27 = vld [vmem:[%s3975_s1 + $0x20] ss:$0 sps:$4 sm:$0xff]  }
  0x47   : > { %v599_v6 = vor.u32 %v598_v21, %v594_v5  ;;  %v604_v40 = vrot.slane %v602_v29, 5  ;;  %v410_v44 = vshll.u32 %v272_v42, 16  ;;  %v2966_v46 = vcombine.low %v2925_v13, %v2928_v17  ;;  %v3035_v28 = vld [vmem:[%s2708_s30 + $0x30] sm:$0xf]  ;;  %2450 = vmatprep.subr.msk.bf16.mxu0 %vm1707_vm6, %v2531_v27  ;;  %2451 = vmatprep.subr.msk.bf16.mxu1 %vm1707_vm6, %v2531_v27 }
  0x48   : > { %v407_v43 = vor.u32 %v406_v31, %v402_v34  ;;  %v595_v39 = vsel %vm2785_vm5, %v590_v36, %v594_v5  ;;  %v832_v59 = vrot.slane %v2895_v53, 5  ;;  %v2224_v61 = vrot.slane %v2892_v52, 9  ;;  %v3041_v31 = vld [vmem:[%s2708_s30 + $0x98] sm:$0x1] }
  0x49   : > { %1181 = vrot.lane.b32.xlu0 %v2916_v2, %s2621_s7  ;;  %v600_v38 = vrot.slane %v599_v6, 4  ;;  %3993 = vst [vmem:[#allocation7_spill] sm:$0xff] %v2966_v46  ;;  %v412_v56 = vrot.slane %v410_v44, 5  ;;  %v835_v63 = vrot.slane %v296_v23, 5  ;;  %v776_v7 = vrot.slane %v2928_v17, 5 }
  0x4a   : > { %1232 = vrot.lane.b32.xlu1 %v2921_v50, %s2622_s8  ;;  %v408_v55 = vrot.slane %v407_v43, 4  ;;  %v834_v62 = vrot.slane %v832_v59, 4  ;;  %v833_v8 = vsel %vm2740_vm4, %v2224_v61, %v832_v59  ;;  %v2216_v18 = vrot.slane %v2925_v13, 9  ;;  %v3012_v23 = vld [vmem:[%s2708_s30 + $0x94] sm:$0xf] }
  0x4b   : > { %v605_v45 = vsel %vm2785_vm5, %v600_v38, %v604_v40  ;;  %v778_v19 = vrot.slane %v776_v7, 4  ;;  %v779_v5 = vrot.slane %v272_v42, 5  ;;  %v620_v20 = vshrl.u32 %v3012_v23, 16  ;;  %v3038_v6 = vld [vmem:[%s2708_s30 + $0x34] sm:$0xf] }
  0x4c   : > { %v2970_v47 = vcombine.low %v595_v39, %v605_v45  ;;  %v413_v60 = vsel %vm2785_vm5, %v408_v55, %v412_v56  ;;  %v836_v52 = vsel %vm2740_vm4, %v834_v62, %v835_v63  ;;  %v777_v17 = vsel %vm2740_vm4, %v2216_v18, %v776_v7  ;;  %v2534_v45 = vld [vmem:[%s3975_s1 + $0x8] sm:$0xff]   ;;  %v275_v61 = vld [vmem:[%s2708_s30 + $0x38] sm:$0x1]  ;;  %v2537_v62 = vld [vmem:[%s3975_s1] sm:$0xff]  }
  0x4d   : > { %1214 = vrot.lane.b32.xlu0 %v2795_v58, %s2622_s8  ;;  %v397_v58 = vor.u32 %v396_v3, %v393_v33  ;;  %v2997_v11 = vcombine.low %v833_v8, %v836_v52  ;;  %v780_v21 = vsel %vm2740_vm4, %v778_v19, %v779_v5  ;;  %v616_v25 = vshll.u32 %v3012_v23, 16 }
  0x4e   : > { %1265 = vrot.lane.b32.xlu1 %v2861_v9, %s2623_s9  ;;  %v3016_v13 = vcombine.low %v777_v17, %v780_v21  ;;  %v622_v3 = vrot.slane %v620_v20, 4  ;;  %v415_v36 = vshrl.u32 %v3035_v28, 16  ;;  %v418_v38 = vshll.u32 %v3035_v28, 16 }
  0x4f   : > { %v398_v35 = vrot.slane %v397_v58, 4  ;;  %v618_v33 = vrot.slane %v616_v25, 5  ;;  %v428_v40 = vshrl.u32 %v3038_v6, 16  ;;  %v424_v42 = vshll.u32 %v3038_v6, 16 }
  0x50   : > { %v626_v44 = vshll.u32 %v3041_v31, 16  ;;  %v420_v55 = vrot.slane %v418_v38, 5  ;;  %v434_v8 = vshll.u32 %v275_v61, 16  ;;  %v839_v19 = vrot.slane %v3012_v23, 5 }
  0x51   : > { %1216 = vrot.lane.b32.xlu0 %v2945_v30, %s2622_s8  ;;  %v403_v15 = vsel %vm2785_vm5, %v398_v35, %v402_v34  ;;  %v1709_v34 = vsel %vm1707_vm6, %v2531_v27, 0  ;;  %v623_v43 = vor.u32 %v622_v3, %v618_v33  ;;  %v417_v35 = vrot.slane %v415_v36, 4  ;;  %v3092_v27 = vld [vmem:[%s2708_s30 + $0x9c] sm:$0xf] }
  0x52   : > { %1267 = vrot.lane.b32.xlu1 %v2949_v32, %s2623_s9  ;;  %v2984_v53 = vcombine.low %v403_v15, %v413_v60  ;;  %2399 = vmatpush3.bf16.msra.mxu0 %v1709_v34  ;;  %v426_v56 = vrot.slane %v424_v42, 5  ;;  %v430_v59 = vrot.slane %v428_v40, 4  ;;  %v3083_v5 = vcombine.low %v3035_v28, %v3038_v6 }
  0x53   : > { %2445 = vmatpush3.bf16.msra.mxu1 %v1709_v34  ;;  %v624_v60 = vrot.slane %v623_v43, 4  ;;  %v421_v63 = vor.u32 %v420_v55, %v417_v35  ;;  %v841_v20 = vrot.slane %v839_v19, 4  ;;  %v842_v25 = vrot.slane %v3041_v31, 5  ;;  %v3127_v43 = vld [vmem:[%s2708_s30 + $0x40] sm:$0xf] }
  0x54   : > { %v431_v7 = vor.u32 %v430_v59, %v426_v56  ;;  %3995 = vst [vmem:[#allocation9_spill] sm:$0xff] %v3083_v5  ;;  %v2217_v36 = vrot.slane %v3035_v28, 9  ;;  %v786_v40 = vrot.slane %v275_v61, 5 }
  0x55   : > { %1249 = vrot.lane.b32.xlu0 %v2880_v37, %s2623_s9  ;;  %v843_v3 = vsel %vm2740_vm4, %v841_v20, %v842_v25 }
  0x56   : > { %1300 = vrot.lane.b32.xlu1 %v2889_v48, %s2624_s10 }
  0x59   : > { %1251 = vrot.lane.b32.xlu0 %v2966_v46, %s2623_s9 }
  0x5a   : > { %1302 = vrot.lane.b32.xlu1 %v2970_v47, %s2624_s10 }
  0x5d   : > { %1284 = vrot.lane.b32.xlu0 %v2916_v2, %s2624_s10 }
  0x5e   : > { %1335 = vrot.lane.b32.xlu1 %v2921_v50, %s2625_s11 }
  0x61   : > { %1286 = vrot.lane.b32.xlu0 %v2984_v53, %s2624_s10 }
  0x62   : > { %1049 = vrot.lane.b32.xlu1 %v2889_v48, %s2620_s6  ;;  %v3009_v48 = vld [vmem:[%s2708_s30 + $0x90] sm:$0xf] }
  0x63   : > { %v607_v49 = vshrl.u32 %v3009_v48, 16  ;;  %v610_v26 = vshll.u32 %v3009_v48, 16  ;;  %v3059_v39 = vcombine.low %v3009_v48, %v3012_v23  ;;  %v2225_v17 = vrot.slane %v3009_v48, 9 }
  0x64   : > { %v432_v23 = vrot.slane %v431_v7, 4 }
  0x65   : > { %1319 = vrot.lane.b32.xlu0 %v2945_v30, %s2625_s11  ;;  %v609_v0 = vrot.slane %v607_v49, 4  ;;  %v612_v29 = vrot.slane %v610_v26, 5  ;;  %3994 = vst [vmem:[#allocation8_spill] sm:$0xff] %v3059_v39  ;;  %v422_v49 = vrot.slane %v421_v63, 4  ;;  %v436_v26 = vrot.slane %v434_v8, 5 }
  0x66   : > { %1337 = vrot.lane.b32.xlu1 %v2997_v11, %s2625_s11 }
  0x67   : > { %v613_v58 = vor.u32 %v612_v29, %v609_v0  ;;  %v427_v48 = vsel %vm2785_vm5, %v422_v49, %v426_v56  ;;  %v437_v0 = vsel %vm2785_vm5, %v432_v23, %v436_v26  ;;  %v840_v29 = vsel %vm2740_vm4, %v2225_v17, %v839_v19  ;;  %v278_v26 = vld [vmem:[%s2708_s30 + $0x44] sm:$0x1] }
  0x68   : > { %v3121_v42 = vcombine.low %v840_v29, %v843_v3 }
  0x69   : > { %1033 = vrot.lane.b32.xlu0 %v2916_v2, %s2620_s6  ;;  %v2532_v2 = vld [vmem:[%s3975_s1 + $0x18] sm:$0xff]   ;;  %v614_v15 = vrot.slane %v613_v58, 4 }
  0x6a   : > { %1051 = vrot.lane.b32.xlu1 %v2970_v47, %s2620_s6  ;;  %2400 = vmatprep.subr.bf16.mxu0 %v2532_v2  ;;  %v3124_v58 = vld [vmem:[%s2708_s30 + $0x3c] sm:$0xf] }
  0x6b   : > { %2441 = vmatprep.subr.bf16.mxu1 %v2532_v2  ;;  %2401 = vmatpush3.bf16.msra.mxu0 %v2532_v2  ;;  %v619_v52 = vsel %vm2785_vm5, %v614_v15, %v618_v33  ;;  %v631_v33 = vshrl.u32 %v3092_v27, 16  ;;  %v439_v56 = vshrl.u32 %v3124_v58, 16  ;;  %v442_v59 = vshll.u32 %v3124_v58, 16 }
  0x6c   : > { %2446 = vmatpush3.bf16.msra.mxu1 %v2532_v2  ;;  %v3095_v2 = vld [vmem:[%s2708_s30 + $0xa0] sm:$0xf]  ;;  %v452_v15 = vshrl.u32 %v3127_v43, 16  ;;  %v3167_v29 = vcombine.low %v3124_v58, %v3127_v43 }
  0x6d   : > { %1321 = vrot.lane.b32.xlu0 %v3016_v13, %s2625_s11  ;;  %v644_v34 = vshrl.u32 %v3095_v2, 16  ;;  %v640_v31 = vshll.u32 %v3095_v2, 16  ;;  %v3148_v7 = vcombine.low %v3092_v27, %v3095_v2  ;;  %v441_v8 = vrot.slane %v439_v56, 4 }
  0x6e   : > { %1129 = vrot.lane.b32.xlu1 %v2921_v50, %s2619_s5  ;;  %v2533_v50 = vld [vmem:[%s3975_s1 + $0x10] sm:$0xff]   ;;  %v454_v19 = vrot.slane %v452_v15, 4  ;;  %3997 = vst [vmem:[#allocation11_spill] sm:$0xff] %v3167_v29  ;;  %v790_v56 = vrot.slane %v3127_v43, 5 }
  0x6f   : > { %2402 = vmatprep.subr.bf16.mxu0 %v2533_v50  ;;  %2442 = vmatprep.subr.bf16.mxu1 %v2533_v50  ;;  %v642_v35 = vrot.slane %v640_v31, 5  ;;  %v646_v55 = vrot.slane %v644_v34, 4  ;;  %3996 = vst [vmem:[#allocation10_spill] sm:$0xff] %v3148_v7 }
  0x70   : > { %2403 = vmatpush3.bf16.msra.mxu0 %v2533_v50  ;;  %2447 = vmatpush3.bf16.msra.mxu1 %v2533_v50  ;;  %v3116_v50 = vcombine.low %v427_v48, %v437_v0 }
  0x71   : > { %1035 = vrot.lane.b32.xlu0 %v2984_v53, %s2620_s6  ;;  %2404 = vmatprep.subr.bf16.mxu0 %v2534_v45  ;;  %v647_v61 = vor.u32 %v646_v55, %v642_v35 }
  0x72   : > { %1131 = vrot.lane.b32.xlu1 %v2997_v11, %s2619_s5  ;;  %2443 = vmatprep.subr.bf16.mxu1 %v2534_v45 }
  0x73   : > { %v648_v49 = vrot.slane %v647_v61, 4 }
  0x74   : > { %2405 = vmatpush3.bf16.msra.mxu0 %v2534_v45  ;;  %2448 = vmatpush3.bf16.msra.mxu1 %v2534_v45 }
  0x75   : > { %1113 = vrot.lane.b32.xlu0 %v2945_v30, %s2619_s5  ;;  %v628_v30 = vrot.slane %v626_v44, 5  ;;  %2406 = vmatprep.subr.bf16.mxu0 %v2537_v62  ;;  %v633_v44 = vrot.slane %v631_v33, 4 }
  0x76   : > { %1164 = vrot.lane.b32.xlu1 %v2949_v32, %s2618_s4  ;;  %2444 = vmatprep.subr.bf16.mxu1 %v2537_v62 }
  0x77   : > { %v629_v18 = vsel %vm2785_vm5, %v624_v60, %v628_v30  ;;  %v448_v60 = vshll.u32 %v3127_v43, 16  ;;  %v2218_v43 = vrot.slane %v3124_v58, 9  ;;  %v3224_v58 = vld [vmem:[%s2708_s30 + $0xa8] sm:$0xf] }
  0x78   : > { %v3088_v21 = vcombine.low %v619_v52, %v629_v18  ;;  %2407 = vmatpush3.bf16.msra.mxu0 %v2537_v62  ;;  %2449 = vmatpush3.bf16.msra.mxu1 %v2537_v62  ;;  %v444_v52 = vrot.slane %v442_v59, 5 }
  0x79   : > { %1115 = vrot.lane.b32.xlu0 %v3016_v13, %s2619_s5  ;;  %v450_v18 = vrot.slane %v448_v60, 5  ;;  %v792_v60 = vrot.slane %v790_v56, 4 }
  0x7a   : > { %1166 = vrot.lane.b32.xlu1 %v3059_v39, %s2618_s4  ;;  %v445_v20 = vor.u32 %v444_v52, %v441_v8  ;;  %v3227_v52 = vld [vmem:[%s2708_s30 + $0xac] sm:$0xf] }
  0x7b   : > { %v455_v25 = vor.u32 %v454_v19, %v450_v18 }
  0x7c   : > { %v446_v3 = vrot.slane %v445_v20, 4 }
  0x7d   : > { %1148 = vrot.lane.b32.xlu0 %v2966_v46, %s2618_s4 }
  0x7e   : > { %1199 = vrot.lane.b32.xlu1 %v2970_v47, %s2621_s7  ;;  %v783_v47 = vrot.slane %v3038_v6, 5  ;;  %v634_v6 = vshll.u32 %v3092_v27, 16 }
  0x80   : > { %v785_v38 = vrot.slane %v783_v47, 4  ;;  %v636_v45 = vrot.slane %v634_v6, 5  ;;  %v784_v28 = vsel %vm2740_vm4, %v2217_v36, %v783_v47  ;;  %v458_v47 = vshll.u32 %v278_v26, 16 }
  0x81   : > { %1150 = vrot.lane.b32.xlu0 %v3083_v5, %s2618_s4  ;;  %v456_v6 = vrot.slane %v455_v25, 4  ;;  %v846_v36 = vrot.slane %v3095_v2, 5 }
  0x82   : > { %1201 = vrot.lane.b32.xlu1 %v3088_v21, %s2621_s7  ;;  %v637_v30 = vor.u32 %v636_v45, %v633_v44  ;;  %v460_v34 = vrot.slane %v458_v47, 5  ;;  %v2226_v45 = vrot.slane %v3092_v27, 9  ;;  %v3253_v47 = vld [vmem:[%s2708_s30 + $0x4c] sm:$0xf] }
  0x84   : > { %v638_v17 = vrot.slane %v637_v30, 4  ;;  %v461_v44 = vsel %vm2785_vm5, %v456_v6, %v460_v34  ;;  %v847_v27 = vsel %vm2740_vm4, %v2226_v45, %v846_v36  ;;  %v793_v30 = vrot.slane %v278_v26, 5 }
  0x85   : > { %1183 = vrot.lane.b32.xlu0 %v2984_v53, %s2621_s7  ;;  %v302_v53 = vld [vmem:[%s2708_s30 + $0xa4] sm:$0x1]  ;;  %v664_v26 = vshll.u32 %v3227_v52, 16  ;;  %v472_v45 = vshll.u32 %v3253_v47, 16 }
  0x86   : > { %1234 = vrot.lane.b32.xlu1 %v2997_v11, %s2622_s8  ;;  %v787_v11 = vsel %vm2740_vm4, %v785_v38, %v786_v40  ;;  %v650_v62 = vshll.u32 %v302_v53, 16  ;;  %v643_v48 = vsel %vm2785_vm5, %v638_v17, %v642_v35  ;;  %v451_v40 = vsel %vm2785_vm5, %v446_v3, %v450_v18 }
  0x87   : > { %v3144_v63 = vcombine.low %v784_v28, %v787_v11  ;;  %v848_v35 = vrot.slane %v846_v36, 4  ;;  %v849_v55 = vrot.slane %v302_v53, 5  ;;  %v3191_v2 = vcombine.low %v451_v40, %v461_v44  ;;  %v305_v36 = vld [vmem:[%s2708_s30 + $0xb0] sm:$0x1] }
  0x88   : > { %v652_v23 = vrot.slane %v650_v62, 5  ;;  %v791_v62 = vsel %vm2740_vm4, %v2218_v43, %v790_v56  ;;  %v655_v17 = vshrl.u32 %v3224_v58, 16  ;;  %v666_v3 = vrot.slane %v664_v26, 5 }
  0x89   : > { %1185 = vrot.lane.b32.xlu0 %v3116_v50, %s2621_s7  ;;  %v850_v53 = vsel %vm2740_vm4, %v848_v35, %v849_v55  ;;  %v476_v44 = vshrl.u32 %v3253_v47, 16 }
  0x8a   : > { %1236 = vrot.lane.b32.xlu1 %v3121_v42, %s2622_s8  ;;  %v653_v0 = vsel %vm2785_vm5, %v648_v49, %v652_v23  ;;  %v3208_v15 = vcombine.low %v847_v27, %v850_v53  ;;  %v658_v49 = vshll.u32 %v3224_v58, 16  ;;  %v668_v23 = vshrl.u32 %v3227_v52, 16 }
  0x8b   : > { %v3171_v33 = vcombine.low %v643_v48, %v653_v0  ;;  %v657_v48 = vrot.slane %v655_v17, 4  ;;  %v674_v27 = vshll.u32 %v305_v36, 16  ;;  %v478_v17 = vrot.slane %v476_v44, 4 }
  0x8c   : > { %v660_v0 = vrot.slane %v658_v49, 5  ;;  %v670_v6 = vrot.slane %v668_v23, 4 }
  0x8d   : > { %1218 = vrot.lane.b32.xlu0 %v3016_v13, %s2622_s8 }
  0x8e   : > { %1269 = vrot.lane.b32.xlu1 %v3059_v39, %s2623_s9  ;;  %v661_v55 = vor.u32 %v660_v0, %v657_v48  ;;  %v671_v56 = vor.u32 %v670_v6, %v666_v3  ;;  %v676_v48 = vrot.slane %v674_v27, 5 }
  0x90   : > { %v3157_v13 = vpop.permute.xlu1 %1160  ;;  %v662_v23 = vrot.slane %v661_v55, 4  ;;  %v672_v26 = vrot.slane %v671_v56, 4 }
  0x91   : > { %1220 = vrot.lane.b32.xlu0 %v3144_v63, %s2622_s8 }
  0x92   : > { %1271 = vrot.lane.b32.xlu1 %v3148_v7, %s2623_s9  ;;  %v3173_v31 = vpop.permute.xlu0 %1144  ;;  %v677_v55 = vsel %vm2785_vm5, %v672_v26, %v676_v48  ;;  %v856_v26 = vrot.slane %v305_v36, 5 }
  0x95   : > { %1253 = vrot.lane.b32.xlu0 %v3083_v5, %s2623_s9  ;;  %v3318_v5 = vld [vmem:[%s2708_s30 + $0xb8] sm:$0xf] }
  0x96   : > { %1304 = vrot.lane.b32.xlu1 %v3088_v21, %s2624_s10 }
  0x98   : > { %v3176_v38 = vpop.permute.xlu1 %1125 }
  0x99   : > { %1255 = vrot.lane.b32.xlu0 %v3167_v29, %s2623_s9 }
  0x9a   : > { %1306 = vrot.lane.b32.xlu1 %v3171_v33, %s2624_s10  ;;  %v3193_v11 = vpop.permute.xlu0 %1109 }
  0x9c   : > { %v3187_v28 = vpop.permute.xlu1 %1127 }
  0x9d   : > { %1288 = vrot.lane.b32.xlu0 %v3116_v50, %s2624_s10 }
  0x9e   : > { %1339 = vrot.lane.b32.xlu1 %v3121_v42, %s2625_s11  ;;  %v3211_v61 = vpop.permute.xlu0 %1111 }
  0xa1   : > { %1290 = vrot.lane.b32.xlu0 %v3191_v2, %s2624_s10  ;;  %v3206_v59 = vpop.permute.xlu1 %1031 }
  0xa2   : > { %1053 = vrot.lane.b32.xlu1 %v3088_v21, %s2620_s6  ;;  %v794_v21 = vsel %vm2740_vm4, %v792_v60, %v793_v30  ;;  %v3276_v30 = vcombine.low %v3224_v58, %v3227_v52 }
  0xa3   : > { %v3233_v19 = vcombine.low %v791_v62, %v794_v21  ;;  %v3279_v62 = vld [vmem:[%s2708_s30 + $0x50] sm:$0x1]  ;;  %v474_v21 = vrot.slane %v472_v45, 5  ;;  %v667_v45 = vsel %vm2785_vm5, %v662_v23, %v666_v3 }
  0xa4   : > { %v482_v6 = vshll.u32 %v3279_v62, 16  ;;  %v3308_v3 = vcombine.low %v667_v45, %v677_v55  ;;  %v692_v45 = vshrl.u32 %v3318_v5, 16 }
  0xa5   : > { %1323 = vrot.lane.b32.xlu0 %v3144_v63, %s2625_s11 }
  0xa6   : > { %1341 = vrot.lane.b32.xlu1 %v3208_v15, %s2625_s11  ;;  %v3231_v18 = vpop.permute.xlu0 %1029 }
  0xa8   : > { %v3221_v8 = vpop.permute.xlu1 %1047 }
  0xa9   : > { %1037 = vrot.lane.b32.xlu0 %v3116_v50, %s2620_s6  ;;  %v3248_v50 = vld [vmem:[%s2708_s30 + $0x48] sm:$0xf] }
  0xaa   : > { %1055 = vrot.lane.b32.xlu1 %v3171_v33, %s2620_s6  ;;  %v463_v40 = vshrl.u32 %v3248_v50, 16  ;;  %v3303_v27 = vcombine.low %v3248_v50, %v3253_v47 }
  0xac   : > { %v3241_v20 = vpop.permute.xlu1 %1162  ;;  %v465_v43 = vrot.slane %v463_v40, 4  ;;  %v479_v40 = vor.u32 %v478_v17, %v474_v21 }
  0xad   : > { %1325 = vrot.lane.b32.xlu0 %v3233_v19, %s2625_s11 }
  0xae   : > { %1133 = vrot.lane.b32.xlu1 %v3121_v42, %s2619_s5  ;;  %v466_v42 = vshll.u32 %v3248_v50, 16  ;;  %v480_v17 = vrot.slane %v479_v40, 4 }
  0xaf   : > { %v3250_v25 = vpop.permute.xlu0 %1045 }
  0xb0   : > { %v3255_v34 = vpop.permute.xlu1 %1195  ;;  %v468_v60 = vrot.slane %v466_v42, 5  ;;  %v853_v42 = vrot.slane %v3227_v52, 5 }
  0xb1   : > { %1039 = vrot.lane.b32.xlu0 %v3191_v2, %s2620_s6 }
  0xb2   : > { %1135 = vrot.lane.b32.xlu1 %v3208_v15, %s2619_s5  ;;  %v855_v23 = vrot.slane %v853_v42, 4 }
  0xb3   : > { %v3266_v35 = vpop.permute.xlu0 %1146 }
  0xb4   : > { %v3268_v53 = vpop.permute.xlu1 %1197 }
  0xb5   : > { %1117 = vrot.lane.b32.xlu0 %v3144_v63, %s2619_s5  ;;  %v469_v63 = vor.u32 %v468_v60, %v465_v43  ;;  %v484_v43 = vrot.slane %v482_v6, 5  ;;  %v2227_v60 = vrot.slane %v3224_v58, 9 }
  0xb6   : > { %1168 = vrot.lane.b32.xlu1 %v3148_v7, %s2618_s4 }
  0xb7   : > { %v3281_v49 = vpop.permute.xlu0 %1179  ;;  %v470_v52 = vrot.slane %v469_v63, 4  ;;  %v3322_v63 = vcombine.low %v2728_v12, %v2733_v14  ;;  %v485_v36 = vsel %vm2785_vm5, %v480_v17, %v484_v43  ;;  %v854_v6 = vsel %vm2740_vm4, %v2227_v60, %v853_v42 }
  0xb8   : > { %v3283_v0 = vpop.permute.xlu1 %1230  ;;  %v857_v12 = vsel %vm2740_vm4, %v855_v23, %v856_v26  ;;  %v800_v60 = vrot.slane %v3279_v62, 5  ;;  %v2231_v17 = vcombine.low %v2750_v22, %v2753_v24  ;;  %v3361_v26 = vld [vmem:[%s2708_s30 + $0x54] sm:$0xf]  ;;  %v694_v22 = vrot.slane %v692_v45, 4 }
  0xb9   : > { %1119 = vrot.lane.b32.xlu0 %v3233_v19, %s2619_s5  ;;  %v475_v58 = vsel %vm2785_vm5, %v470_v52, %v474_v21  ;;  %v688_v21 = vshll.u32 %v3318_v5, 16  ;;  %v2219_v52 = vrot.slane %v3248_v50, 9  ;;  %v1378_v23 = vsel %vm1351_vm7, %v3322_v63, %v3250_v25  ;;  %v3373_v25 = vld [vmem:[%s2708_s30 + $0xbc] sm:$0x1] }
  0xba   : > { %1170 = vrot.lane.b32.xlu1 %v3276_v30, %s2618_s4  ;;  %v3348_v42 = vcombine.low %v475_v58, %v485_v36  ;;  %v3358_v50 = vcombine.low %v854_v6, %v857_v12  ;;  %v3366_v58 = vld [vmem:[%s2708_s30 + $0x58] sm:$0xf]  ;;  %v1418_v6 = vsel %vm1400_vm8, %v1378_v23, %v3176_v38  ;;  %v1354_v46 = vsel %vm1351_vm7, %v2231_v17, %v3231_v18 }
  0xbb   : > { %v3291_v44 = vpop.permute.xlu0 %1181  ;;  %v3368_v39 = vrot.slane %v688_v21, 5  ;;  %v496_v45 = vshll.u32 %v3366_v58, 16 }
  0xbc   : > { %v3297_v56 = vpop.permute.xlu1 %1232 }
  0xbd   : > { %1152 = vrot.lane.b32.xlu0 %v3167_v29, %s2618_s4  ;;  %v3315_v29 = vld [vmem:[%s2708_s30 + $0xb4] sm:$0xf] }
  0xbe   : > { %1203 = vrot.lane.b32.xlu1 %v3171_v33, %s2621_s7  ;;  %v797_v33 = vrot.slane %v3253_v47, 5  ;;  %v679_v47 = vshrl.u32 %v3315_v29, 16  ;;  %v682_v40 = vshll.u32 %v3315_v29, 16  ;;  %v3397_v57 = vcombine.low %v3315_v29, %v3318_v5 }
  0xbf   : > { %v3310_v48 = vpop.permute.xlu0 %1214 }
  0xc0   : > { %v3312_v7 = vpop.permute.xlu1 %1265  ;;  %v799_v43 = vrot.slane %v797_v33, 4  ;;  %v681_v62 = vrot.slane %v679_v47, 4  ;;  %v684_v36 = vrot.slane %v682_v40, 5  ;;  %v487_v47 = vshrl.u32 %v3361_v26, 16 }
  0xc1   : > { %1154 = vrot.lane.b32.xlu0 %v3303_v27, %s2618_s4  ;;  %v490_v40 = vshll.u32 %v3361_v26, 16 }
  0xc2   : > { %1205 = vrot.lane.b32.xlu1 %v3308_v3, %s2621_s7  ;;  %v801_v12 = vsel %vm2740_vm4, %v799_v43, %v800_v60  ;;  %v685_v21 = vor.u32 %v684_v36, %v681_v62  ;;  %v698_v43 = vshll.u32 %v3373_v25, 16  ;;  %v1451_v60 = vsel %vm1433_vm9, %v1418_v6, %v3157_v13 }
  0xc3   : > { %v3337_v14 = vpop.permute.xlu0 %1216  ;;  %v1484_v62 = vsel %vm1466_vm10, %v1451_v60, %v3255_v34  ;;  %v489_v36 = vrot.slane %v487_v47, 4  ;;  %v3412_v6 = vrot.slane %v496_v45, 5 }
  0xc4   : > { %v3343_v55 = vpop.permute.xlu1 %1267  ;;  %v1517_v13 = vsel %vm1499_vm11, %v1484_v62, %v3283_v0  ;;  %v700_v47 = vrot.slane %v698_v43, 5  ;;  %v1381_v0 = vsel %vm1351_vm7, %v2720_v4, %v3221_v8 }
  0xc5   : > { %1187 = vrot.lane.b32.xlu0 %v3191_v2, %s2621_s7  ;;  %v1550_v34 = vsel %vm1532_vm12, %v1517_v13, %v3312_v7 }
  0xc6   : > { %1238 = vrot.lane.b32.xlu1 %v3208_v15, %s2622_s8  ;;  %v798_v15 = vsel %vm2740_vm4, %v2219_v52, %v797_v33  ;;  %v500_v33 = vshrl.u32 %v3366_v58, 16  ;;  %v695_v52 = vor.u32 %v694_v22, %v3368_v39  ;;  %v492_v22 = vrot.slane %v490_v40, 5 }
  0xc7   : > { %v3363_v2 = vpop.permute.xlu0 %1249  ;;  %v3393_v23 = vcombine.low %v798_v15, %v801_v12  ;;  %v3410_v15 = vld [vmem:[%s2708_s30 + $0x5c] sm:$0x1]  ;;  %v686_v12 = vrot.slane %v685_v21, 4  ;;  %v1402_v40 = vsel %vm1400_vm8, %v1354_v46, %v3193_v11  ;;  %v1420_v11 = vsel %vm1400_vm8, %v1381_v0, %v3187_v28 }
  0xc8   : > { %v1301_v24 = vpop.permute.xlu1 %1300  ;;  %v502_v18 = vrot.slane %v500_v33, 4  ;;  %v493_v7 = vor.u32 %v492_v22, %v489_v36  ;;  %v506_v45 = vshll.u32 %v3410_v15, 16  ;;  %v1435_v8 = vsel %vm1433_vm9, %v1402_v40, %v3173_v31 }
  0xc9   : > { %1189 = vrot.lane.b32.xlu0 %v3348_v42, %s2621_s7  ;;  %v1583_v60 = vsel %vm1565_vm13, %v1550_v34, %v1301_v24  ;;  %v691_v21 = vsel %vm2785_vm5, %v686_v12, %v3368_v39  ;;  %v1453_v43 = vsel %vm1433_vm9, %v1420_v11, %v3241_v20  ;;  %v1468_v36 = vsel %vm1466_vm10, %v1435_v8, %v3281_v49 }
  0xca   : > { %1240 = vrot.lane.b32.xlu1 %v3358_v50, %s2622_s8  ;;  %v503_v46 = vor.u32 %v502_v18, %v3412_v6  ;;  %v3445_v28 = vcombine.low %v3361_v26, %v3366_v58  ;;  %v1486_v31 = vsel %vm1466_vm10, %v1453_v43, %v3268_v53  ;;  %v1501_v39 = vsel %vm1499_vm11, %v1468_v36, %v3310_v48 }
  0xcb   : > { %v3387_v38 = vpop.permute.xlu0 %1251  ;;  %v494_v13 = vrot.slane %v493_v7, 4  ;;  %v508_v20 = vrot.slane %v506_v45, 5  ;;  %v1519_v49 = vsel %vm1499_vm11, %v1486_v31, %v3297_v56  ;;  %v1534_v18 = vsel %vm1532_vm12, %v1501_v39, %v3363_v2  ;;  %v310_v39 = vld [vmem:[%s2708_s30 + $0xc4] sm:$0xf] }
  0xcc   : > { %v1303_v54 = vpop.permute.xlu1 %1302  ;;  %v504_v53 = vrot.slane %v503_v46, 4  ;;  %v1357_v48 = vsel %vm1351_vm7, %v2725_v10, %v3206_v59  ;;  %v1552_v12 = vsel %vm1532_vm12, %v1519_v49, %v3343_v55  ;;  %v860_v56 = vrot.slane %v3318_v5, 5 }
  0xcd   : > { %1222 = vrot.lane.b32.xlu0 %v3233_v19, %s2622_s8  ;;  %v696_v19 = vrot.slane %v695_v52, 4  ;;  %v1585_v2 = vsel %vm1565_vm13, %v1552_v12, %v1303_v54  ;;  %v1404_v59 = vsel %vm1400_vm8, %v1357_v48, %v3211_v61  ;;  %v499_v54 = vsel %vm2785_vm5, %v494_v13, %v3412_v6 }
  0xce   : > { %1273 = vrot.lane.b32.xlu1 %v3276_v30, %s2623_s9  ;;  %v509_v5 = vsel %vm2785_vm5, %v504_v53, %v508_v20  ;;  %v1437_v55 = vsel %vm1433_vm9, %v1404_v59, %v3266_v35  ;;  %v862_v61 = vrot.slane %v860_v56, 4  ;;  %v879_v53 = vshrl.u32 %v310_v39, 16 }
  0xcf   : > { %v1285_v17 = vpop.permute.xlu0 %1284  ;;  %v701_v52 = vsel %vm2785_vm5, %v696_v19, %v700_v47  ;;  %v3500_v45 = vcombine.low %v499_v54, %v509_v5  ;;  %v875_v48 = vshll.u32 %v310_v39, 16 }
  0xd0   : > { %v1336_v62 = vpop.permute.xlu1 %1335  ;;  %v3461_v34 = vcombine.low %v691_v21, %v701_v52  ;;  %v1567_v19 = vsel %vm1565_vm13, %v1534_v18, %v1285_v17  ;;  %v807_v21 = vrot.slane %v3410_v15, 5  ;;  %v309_v15 = vld [vmem:[%s2708_s30 + $0xc0] sm:$0xf] }
  0xd1   : > { %1224 = vrot.lane.b32.xlu0 %v3393_v23, %s2622_s8  ;;  %v1616_v33 = vsel %vm1598_vm14, %v1583_v60, %v1336_v62  ;;  %v2228_v60 = vrot.slane %v3315_v29, 9  ;;  %v863_v62 = vrot.slane %v3373_v25, 5  ;;  %v804_v29 = vrot.slane %v3366_v58, 5 }
  0xd2   : > { %1275 = vrot.lane.b32.xlu1 %v3397_v57, %s2623_s9  ;;  %2424 = vmatprep.mubr.msk.bf16.mxu1 %vm1674_vm15, %v1616_v33  ;;  %v1470_v33 = vsel %vm1466_vm10, %v1437_v55, %v3291_v44  ;;  %v866_v49 = vshrl.u32 %v309_v15, 16  ;;  %v869_v18 = vshll.u32 %v309_v15, 16  ;;  %v2279_v55 = vcombine.low %v309_v15, %v310_v39 }
  0xd3   : > { %v1287_v24 = vpop.permute.xlu0 %1286  ;;  %v1503_v6 = vsel %vm1499_vm11, %v1470_v33, %v3337_v14  ;;  %v861_v46 = vsel %vm2740_vm4, %v2228_v60, %v860_v56  ;;  %v864_v14 = vsel %vm2740_vm4, %v862_v61, %v863_v62  ;;  %v877_v56 = vrot.slane %v875_v48, 5 }
  0xd4   : > { %v3447_v22 = vpop.permute.xlu1 %1049  ;;  %v1536_v35 = vsel %vm1532_vm12, %v1503_v6, %v3387_v38  ;;  %v3520_v58 = vcombine.low %v861_v46, %v864_v14  ;;  %v2220_v38 = vrot.slane %v3361_v26, 9 }
  0xd5   : > { %1257 = vrot.lane.b32.xlu0 %v3303_v27, %s2623_s9  ;;  %v1569_v44 = vsel %vm1565_vm13, %v1536_v35, %v1287_v24  ;;  %v806_v24 = vrot.slane %v804_v29, 4 }
  0xd6   : > { %1308 = vrot.lane.b32.xlu1 %v3308_v3, %s2624_s10 }
  0xd7   : > { %v1320_v47 = vpop.permute.xlu0 %1319  ;;  %v808_v36 = vsel %vm2740_vm4, %v806_v24, %v807_v21  ;;  %v3595_v21 = vld [vmem:[%s2708_s30 + $0xcc] sm:$0xf] }
  0xd8   : > { %v1600_v40 = vsel %vm1598_vm14, %v1567_v19, %v1320_v47  ;;  %v1338_v0 = vpop.permute.xlu1 %1337  ;;  %v868_v19 = vrot.slane %v866_v49, 4  ;;  %v871_v47 = vrot.slane %v869_v18, 5 }
  0xd9   : > { %1259 = vrot.lane.b32.xlu0 %v3445_v28, %s2623_s9  ;;  %2408 = vmatprep.mubr.msk.bf16.mxu0 %vm1674_vm15, %v1600_v40  ;;  %v1618_v10 = vsel %vm1598_vm14, %v1585_v2, %v1338_v0  ;;  %v881_v2 = vrot.slane %v879_v53, 4  ;;  %v311_v0 = vld [vmem:[%s2708_s30 + $0xc8] sm:$0x1] }
  0xda   : > { %1310 = vrot.lane.b32.xlu1 %v3461_v34, %s2624_s10  ;;  %2425 = vmatmul.mubr.msk.bf16.vlgmr.msra.gmra.mxu1 %vm1674_vm15, %v1618_v10  ;;  %v872_v59 = vor.u32 %v871_v47, %v868_v19  ;;  %v897_v24 = vrot.slane %v311_v0, 5 }
  0xdb   : > { %v3488_v17 = vpop.permute.xlu0 %1033  ;;  %v882_v54 = vor.u32 %v881_v2, %v877_v56 }
  0xdc   : > { %v3494_v7 = vpop.permute.xlu1 %1051  ;;  %v873_v61 = vrot.slane %v872_v59, 4 }
  0xdd   : > { %1292 = vrot.lane.b32.xlu0 %v3348_v42, %s2624_s10  ;;  %v883_v62 = vrot.slane %v882_v54, 4 }
  0xde   : > { %1343 = vrot.lane.b32.xlu1 %v3358_v50, %s2625_s11 }
  0xdf   : > { %v1322_v25 = vpop.permute.xlu0 %1321 }
  0xe0   : > { %v1602_v11 = vsel %vm1598_vm14, %v1569_v44, %v1322_v25  ;;  %v3513_v8 = vpop.permute.xlu1 %1129  ;;  %v894_v44 = vrot.slane %v310_v39, 5  ;;  %v903_v39 = vshll.u32 %v3595_v21, 16 }
  0xe1   : > { %1294 = vrot.lane.b32.xlu0 %v3500_v45, %s2624_s10  ;;  %2409 = vmatmul.mubr.msk.bf16.vlgmr.msra.gmra.mxu0 %vm1674_vm15, %v1602_v11  ;;  %v2229_v11 = vrot.slane %v309_v15, 9 }
  0xe2   : > { %1057 = vrot.lane.b32.xlu1 %v3308_v3, %s2620_s6  ;;  %v805_v3 = vsel %vm2740_vm4, %v2220_v38, %v804_v29  ;;  %v896_v38 = vrot.slane %v894_v44, 4  ;;  %v905_v2 = vrot.slane %v903_v39, 5 }
  0xe3   : > { %v3524_v52 = vpop.permute.xlu0 %1035  ;;  %v3544_v13 = vcombine.low %v805_v3, %v808_v36  ;;  %v3598_v36 = vld [vmem:[%s2708_s30 + $0xd0] sm:$0xf]  ;;  %v895_v15 = vsel %vm2740_vm4, %v2229_v11, %v894_v44 }
  0xe4   : > { %v3526_v43 = vpop.permute.xlu1 %1131  ;;  %v898_v18 = vsel %vm2740_vm4, %v896_v38, %v897_v24  ;;  %v913_v53 = vshrl.u32 %v3598_v36, 16  ;;  %v909_v48 = vshll.u32 %v3598_v36, 16 }
  0xe5   : > { %1327 = vrot.lane.b32.xlu0 %v3393_v23, %s2625_s11  ;;  %v3618_v47 = vcombine.low %v895_v15, %v898_v18 }
  0xe6   : > { %1345 = vrot.lane.b32.xlu1 %v3520_v58, %s2625_s11  ;;  %v911_v59 = vrot.slane %v909_v48, 5  ;;  %v915_v54 = vrot.slane %v913_v53, 4 }
  0xe7   : > { %v3536_v26 = vpop.permute.xlu0 %1113 }
  0xe8   : > { %v3538_v31 = vpop.permute.xlu1 %1164 }
  0xe9   : > { %1041 = vrot.lane.b32.xlu0 %v3348_v42, %s2620_s6 }
  0xea   : > { %1059 = vrot.lane.b32.xlu1 %v3461_v34, %s2620_s6 }
  0xeb   : > { %v3548_v20 = vpop.permute.xlu0 %1115 }
  0xec   : > { %v3550_v12 = vpop.permute.xlu1 %1166 }
  0xed   : > { %1329 = vrot.lane.b32.xlu0 %v3544_v13, %s2625_s11 }
  0xee   : > { %1137 = vrot.lane.b32.xlu1 %v3358_v50, %s2619_s5  ;;  %v885_v50 = vshll.u32 %v311_v0, 16 }
  0xef   : > { %v3556_v42 = vpop.permute.xlu0 %1148 }
  0xf0   : > { %v3558_v40 = vpop.permute.xlu1 %1199  ;;  %v887_v33 = vrot.slane %v885_v50, 5 }
  0xf1   : > { %1043 = vrot.lane.b32.xlu0 %v3500_v45, %s2620_s6 }
  0xf2   : > { %1139 = vrot.lane.b32.xlu1 %v3520_v58, %s2619_s5  ;;  %v888_v29 = vsel %vm2785_vm5, %v883_v62, %v887_v33 }
  0xf3   : > { %v3565_v10 = vpop.permute.xlu0 %1150 }
  0xf4   : > { %v3567_v5 = vpop.permute.xlu1 %1201 }
  0xf5   : > { %1121 = vrot.lane.b32.xlu0 %v3393_v23, %s2619_s5  ;;  %v878_v23 = vsel %vm2785_vm5, %v873_v61, %v877_v56  ;;  %v3621_v61 = vld [vmem:[%s2708_s30 + $0xd4] sm:$0x1]  ;;  %s233_s30 = sand.u32 1, %s2600_s13  }
  0xf6   : > { %1172 = vrot.lane.b32.xlu1 %v3397_v57, %s2618_s4  ;;  %v3590_v46 = vcombine.low %v878_v23, %v888_v29  ;;  %v916_v23 = vor.u32 %v915_v54, %v911_v59  ;;  %v919_v29 = vshll.u32 %v3621_v61, 16  ;;  %v931_v54 = vrot.slane %v3621_v61, 5  ;;  %s2211_s6 = sshll.u32 %s233_s30, 7 }
  0xf7   : > { %v3573_v60 = vpop.permute.xlu0 %1183 }
  0xf8   : > { %v1235_v6 = vpop.permute.xlu1 %1234  ;;  %v917_v39 = vrot.slane %v916_v23, 4 }
  0xf9   : > { %1123 = vrot.lane.b32.xlu0 %v3544_v13, %s2619_s5 }
  0xfa   : > { %1174 = vrot.lane.b32.xlu1 %v2279_v55, %s2618_s4 }
  0xfb   : > { %v3578_v35 = vpop.permute.xlu0 %1185 }
  0xfc   : > { %v3584_v25 = vpop.permute.xlu1 %1236 }
  0xfd   : > { %1156 = vrot.lane.b32.xlu0 %v3445_v28, %s2618_s4 }
  0xfe   : > { %1207 = vrot.lane.b32.xlu1 %v3461_v34, %s2621_s7  ;;  %v900_v34 = vshrl.u32 %v3595_v21, 16 }
  0xff   : > { %v3592_v14 = vpop.permute.xlu0 %1218 }
 0x100   : > { %v1270_v3 = vpop.permute.xlu1 %1269  ;;  %v902_v56 = vrot.slane %v900_v34, 4 }
 0x101   : > { %1158 = vrot.lane.b32.xlu0 %v3322_v63, %s2618_s4 }
 0x102   : > { %1209 = vrot.lane.b32.xlu1 %v3590_v46, %s2621_s7 }
 0x103   : > { %v3606_v49 = vpop.permute.xlu0 %1220 }
 0x104   : > { %v1272_v19 = vpop.permute.xlu1 %1271 }
 0x105   : > { %1191 = vrot.lane.b32.xlu0 %v3500_v45, %s2621_s7  ;;  %v1384_v45 = vsel %vm1351_vm7, %v2861_v9, %v3447_v22  ;;  %v2282_v22 = vcombine.low %v3595_v21, %v3598_v36 }
 0x106   : > { %1242 = vrot.lane.b32.xlu1 %v3520_v58, %s2622_s8  ;;  %v906_v58 = vor.u32 %v905_v2, %v902_v56  ;;  %v1422_v62 = vsel %vm1400_vm8, %v1384_v45, %v3513_v8 }
 0x107   : > { %v1254_v0 = vpop.permute.xlu0 %1253  ;;  %v1455_v44 = vsel %vm1433_vm9, %v1422_v62, %v3538_v31  ;;  %v921_v31 = vrot.slane %v919_v29, 5 }
 0x108   : > { %v1305_v50 = vpop.permute.xlu1 %1304  ;;  %v1488_v38 = vsel %vm1466_vm10, %v1455_v44, %v3558_v40  ;;  %v907_v8 = vrot.slane %v906_v58, 4 }
 0x109   : > { %1193 = vrot.lane.b32.xlu0 %v2873_v1, %s2621_s7  ;;  %v1521_v9 = vsel %vm1499_vm11, %v1488_v38, %v1235_v6  ;;  %v4000_v38 = vld [vmem:[#allocation5_spill] sm:$0xff]  ;;  %s3821_s7 = scalar_lea.vmem [#allocation2], %s2211_s6 }
 0x10a   : > { %1244 = vrot.lane.b32.xlu1 %v3618_v47, %s2622_s8  ;;  %v1554_v24 = vsel %vm1532_vm12, %v1521_v9, %v1270_v3  ;;  %v912_v3 = vsel %vm2785_vm5, %v907_v8, %v911_v59 }
 0x10b   : > { %v3632_v33 = vpop.permute.xlu0 %1255  ;;  %v1587_v15 = vsel %vm1565_vm13, %v1554_v24, %v1305_v50 }
 0x10c   : > { %v1307_v11 = vpop.permute.xlu1 %1306 }
 0x10d   : > { %1226 = vrot.lane.b32.xlu0 %v3544_v13, %s2622_s8  ;;  %v1360_v13 = vsel %vm1351_vm7, %v2880_v37, %v3488_v17 }
 0x10e   : > { %1277 = vrot.lane.b32.xlu1 %v2279_v55, %s2623_s9  ;;  %v1387_v55 = vsel %vm1351_vm7, %v2949_v32, %v3494_v7  ;;  %v1406_v6 = vsel %vm1400_vm8, %v1360_v13, %v3536_v26  ;;  %v922_v32 = vsel %vm2785_vm5, %v917_v39, %v921_v31  ;;  %v928_v7 = vrot.slane %v3598_v36, 5 }
 0x10f   : > { %v1289_v34 = vpop.permute.xlu0 %1288  ;;  %v1424_v37 = vsel %vm1400_vm8, %v1387_v55, %v3526_v43  ;;  %v1439_v17 = vsel %vm1433_vm9, %v1406_v6, %v3556_v42 }
 0x110   : > { %v1340_v18 = vpop.permute.xlu1 %1339  ;;  %v1457_v26 = vsel %vm1433_vm9, %v1424_v37, %v3550_v12  ;;  %v1472_v48 = vsel %vm1466_vm10, %v1439_v17, %v3573_v60  ;;  %v2283_v12 = vcombine.low %v912_v3, %v922_v32  ;;  %v2230_v60 = vrot.slane %v3595_v21, 9  ;;  %v4001_v17 = vld [vmem:[#allocation8_spill] sm:$0xff] }
 0x111   : > { %1228 = vrot.lane.b32.xlu0 %v2771_v41, %s2622_s8  ;;  %v1620_v40 = vsel %vm1598_vm14, %v1587_v15, %v1340_v18  ;;  %v1490_v43 = vsel %vm1466_vm10, %v1457_v26, %v3567_v5  ;;  %v1505_v42 = vsel %vm1499_vm11, %v1472_v48, %v3592_v14  ;;  %v930_v14 = vrot.slane %v928_v7, 4  ;;  %s2376_s8 = sshll.u32 %s2608_s15, 11  ;;  %s3927_s15 = scalar_lea.sflag [#allocation3], %s233_s30 }
 0x112   : > { %1279 = vrot.lane.b32.xlu1 %v2282_v22, %s2623_s9  ;;  %2428 = vmatprep.mubr.msk.bf16.mxu1 %vm1674_vm15, %v1620_v40  ;;  %v1523_v51 = vsel %vm1499_vm11, %v1490_v43, %v3584_v25  ;;  %v1538_v36 = vsel %vm1532_vm12, %v1505_v42, %v1254_v0  ;;  %v3998_v0 = vld [vmem:[#allocation7_spill] sm:$0xff]  ;;  %s3917_s23 = scalar_lea.hbm %s3977_s3, %s2376_s8 }
 0x113   : > { %v1291_v53 = vpop.permute.xlu0 %1290  ;;  %v1556_v2 = vsel %vm1532_vm12, %v1523_v51, %v1272_v19  ;;  %v1571_v5 = vsel %vm1565_vm13, %v1538_v36, %v1289_v34 }
 0x114   : > { %v3673_v56 = vpop.permute.xlu1 %1053 }
 0x115   : > { %1261 = vrot.lane.b32.xlu0 %v3322_v63, %s2623_s9  ;;  %v1589_v63 = vsel %vm1565_vm13, %v1556_v2, %v1307_v11  ;;  %v3999_v11 = vld [vmem:[#allocation6_spill] sm:$0xff]  ;;  %v4002_v2 = vld [vmem:[#allocation9_spill] sm:$0xff] }
 0x116   : > { %1312 = vrot.lane.b32.xlu1 %v3590_v46, %s2624_s10  ;;  %v1363_v46 = vsel %vm1351_vm7, %v3998_v0, %v3524_v52  ;;  %v929_v52 = vsel %vm2740_vm4, %v2230_v60, %v928_v7 }
 0x117   : > { %v1324_v59 = vpop.permute.xlu0 %1323  ;;  %v1408_v19 = vsel %vm1400_vm8, %v1363_v46, %v3548_v20 }
 0x118   : > { %v1604_v25 = vsel %vm1598_vm14, %v1571_v5, %v1324_v59  ;;  %v1342_v50 = vpop.permute.xlu1 %1341  ;;  %v1441_v61 = vsel %vm1433_vm9, %v1408_v19, %v3565_v10  ;;  %v4003_v59 = vld [vmem:[#allocation10_spill] sm:$0xff] }
 0x119   : > { %1263 = vrot.lane.b32.xlu0 %v2720_v4, %s2623_s9  ;;  %2412 = vmatprep.mubr.msk.bf16.mxu0 %vm1674_vm15, %v1604_v25  ;;  %v1622_v21 = vsel %vm1598_vm14, %v1589_v63, %v1342_v50  ;;  %v932_v4 = vsel %vm2740_vm4, %v930_v14, %v931_v54  ;;  %v1474_v58 = vsel %vm1466_vm10, %v1441_v61, %v3578_v35  ;;  %s2084_s9 = sshll.u32 %s3821_s7, 4  ;;  %s3921_s9 = int_to_ptr.vmem [resolvable:$true] %s2084_s9 }
 0x11a   : > { %1314 = vrot.lane.b32.xlu1 %v2283_v12, %s2624_s10  ;;  %2429 = vmatmul.mubr.msk.bf16.gmra.mxu1 %vm1674_vm15, %v1622_v21  ;;  %v1507_v20 = vsel %vm1499_vm11, %v1474_v58, %v3606_v49  ;;  %v2284_v23 = vcombine.low %v929_v52, %v932_v4  ;;  %s2540_s26 = scalar_lea.vmem %s3921_s9, 2048  ;;  %p2547_p1 = scmp.lt.s32.totalorder %s3921_s9, %s2545_s28 }
 0x11b   : > { %v1038_v45 = vpop.permute.xlu0 %1037  ;;  %v1540_v10 = vsel %vm1532_vm12, %v1507_v20, %v3632_v33  ;;  %p2541_p12 = scmp.ne.s32.totalorder %s3921_s9, %s2540_s26  ;;  %p2548_p2 = scmp.lt.s32.totalorder %s2546_s29, %s2540_s26 }
 0x11c   : > { %v1056_v62 = vpop.permute.xlu1 %1055  ;;  %v1573_v16 = vsel %vm1565_vm13, %v1540_v10, %v1291_v53  ;;  %v1390_v53 = vsel %vm1351_vm7, %v4001_v17, %v3673_v56  ;;  %v1366_v5 = vsel %vm1351_vm7, %v4002_v2, %v1038_v45 }
 0x11d   : > { %1296 = vrot.lane.b32.xlu0 %v2873_v1, %s2624_s10  ;;  %v1393_v14 = vsel %vm1351_vm7, %v4003_v59, %v1056_v62  ;;  %p2542_p13 = pnand %p2541_p12, %p2688_p4  ;;  %p2549_p3 = por %p2548_p2, %p2547_p1 }
 0x11e   : > { %1347 = vrot.lane.b32.xlu1 %v3618_v47, %s2625_s11 }
 0x11f   : > { %v1326_v29 = vpop.permute.xlu0 %1325  ;;  %p2543_p0 = pneg %p2542_p13 }
 0x120   : > { %v1606_v44 = vsel %vm1598_vm14, %v1573_v16, %v1326_v29  ;;  %v1134_v35 = vpop.permute.xlu1 %1133  ;;  %v4004_v16 = vld [vmem:[#allocation11_spill] sm:$0xff] }
 0x121   : > { %1298 = vrot.lane.b32.xlu0 %v3999_v11, %s2624_s10  ;;  %2413 = vmatmul.mubr.msk.bf16.gmra.mxu0 %vm1674_vm15, %v1606_v44  ;;  %v1426_v32 = vsel %vm1400_vm8, %v1390_v53, %v1134_v35  ;;  %p2550_p5 = pnand %p2549_p3, %p2543_p0 }
 0x122   : > { %1349 = vrot.lane.b32.xlu1 %v2284_v23, %s2625_s11 }
 0x123   : > { %v1040_v1 = vpop.permute.xlu0 %1039 }
 0x124   : > { %v1136_v49 = vpop.permute.xlu1 %1135  ;;  %v1369_v29 = vsel %vm1351_vm7, %v4004_v16, %v1040_v1 }
 0x125   : > { %1331 = vrot.lane.b32.xlu0 %v2771_v41, %s2625_s11  ;;  %v1428_v63 = vsel %vm1400_vm8, %v1393_v14, %v1136_v49 }
 0x127   : > { %v1118_v47 = vpop.permute.xlu0 %1117 }
 0x128   : > { %v1169_v33 = vpop.permute.xlu1 %1168  ;;  %v1410_v54 = vsel %vm1400_vm8, %v1366_v5, %v1118_v47 }
 0x129   : > { %1333 = vrot.lane.b32.xlu0 %v4000_v38, %s2625_s11  ;;  %v1459_v26 = vsel %vm1433_vm9, %v1426_v32, %v1169_v33 }
 0x12b   : > { %v1120_v9 = vpop.permute.xlu0 %1119 }
 0x12c   : > { %v1171_v22 = vpop.permute.xlu1 %1170  ;;  %v1412_v35 = vsel %vm1400_vm8, %v1369_v29, %v1120_v9 }
 0x12d   : > { %v1461_v0 = vsel %vm1433_vm9, %v1428_v63, %v1171_v22 }
 0x12f   : > { %v1153_v8 = vpop.permute.xlu0 %1152 }
 0x130   : > { %v1204_v24 = vpop.permute.xlu1 %1203  ;;  %v1443_v25 = vsel %vm1433_vm9, %v1410_v54, %v1153_v8 }
 0x131   : > { %v1492_v43 = vsel %vm1466_vm10, %v1459_v26, %v1204_v24 }
 0x133   : > { %v1155_v34 = vpop.permute.xlu0 %1154 }
 0x134   : > { %v1206_v39 = vpop.permute.xlu1 %1205  ;;  %v1445_v11 = vsel %vm1433_vm9, %v1412_v35, %v1155_v34 }
 0x135   : > { %v1494_v19 = vsel %vm1466_vm10, %v1461_v0, %v1206_v39 }
 0x137   : > { %v1188_v31 = vpop.permute.xlu0 %1187 }
 0x138   : > { %v1239_v15 = vpop.permute.xlu1 %1238  ;;  %v1476_v46 = vsel %vm1466_vm10, %v1443_v25, %v1188_v31 }
 0x139   : > { %v1525_v42 = vsel %vm1499_vm11, %v1492_v43, %v1239_v15 }
 0x13b   : > { %v1190_v18 = vpop.permute.xlu0 %1189 }
 0x13c   : > { %v1241_v13 = vpop.permute.xlu1 %1240  ;;  %v1478_v47 = vsel %vm1466_vm10, %v1445_v11, %v1190_v18 }
 0x13d   : > { %v1527_v45 = vsel %vm1499_vm11, %v1494_v19, %v1241_v13 }
 0x13f   : > { %v1223_v40 = vpop.permute.xlu0 %1222 }
 0x140   : > { %v1274_v55 = vpop.permute.xlu1 %1273  ;;  %v1509_v61 = vsel %vm1499_vm11, %v1476_v46, %v1223_v40 }
 0x141   : > { %v1558_v51 = vsel %vm1532_vm12, %v1525_v42, %v1274_v55 }
 0x143   : > { %v1225_v6 = vpop.permute.xlu0 %1224 }
 0x144   : > { %v1276_v3 = vpop.permute.xlu1 %1275  ;;  %v1511_v38 = vsel %vm1499_vm11, %v1478_v47, %v1225_v6 }
 0x145   : > { %v1560_v4 = vsel %vm1532_vm12, %v1527_v45, %v1276_v3 }
 0x147   : > { %v1258_v41 = vpop.permute.xlu0 %1257 }
 0x148   : > { %v1309_v37 = vpop.permute.xlu1 %1308  ;;  %v1542_v52 = vsel %vm1532_vm12, %v1509_v61, %v1258_v41 }
 0x149   : > { %v1591_v12 = vsel %vm1565_vm13, %v1558_v51, %v1309_v37 }
 0x14b   : > { %v1260_v7 = vpop.permute.xlu0 %1259 }
 0x14c   : > { %v1311_v48 = vpop.permute.xlu1 %1310  ;;  %v1544_v22 = vsel %vm1532_vm12, %v1511_v38, %v1260_v7 }
 0x14d   : > { %v1593_v20 = vsel %vm1565_vm13, %v1560_v4, %v1311_v48 }
 0x14f   : > { %v1293_v36 = vpop.permute.xlu0 %1292 }
 0x150   : > { %v1344_v60 = vpop.permute.xlu1 %1343  ;;  %v1575_v58 = vsel %vm1565_vm13, %v1542_v52, %v1293_v36 }
 0x151   : > { %v1624_v56 = vsel %vm1598_vm14, %v1591_v12, %v1344_v60 }
 0x152   : > { %2432 = vmatprep.mubr.msk.bf16.mxu1 %vm1674_vm15, %v1624_v56 }
 0x153   : > { %v1295_v50 = vpop.permute.xlu0 %1294 }
 0x154   : > { %v1058_v21 = vpop.permute.xlu1 %1057  ;;  %v1577_v1 = vsel %vm1565_vm13, %v1544_v22, %v1295_v50 }
 0x155   : > { %v1396_v51 = vsel %vm1351_vm7, %v3276_v30, %v1058_v21 }
 0x157   : > { %v1328_v62 = vpop.permute.xlu0 %1327 }
 0x158   : > { %v1608_v10 = vsel %vm1598_vm14, %v1575_v58, %v1328_v62  ;;  %v1346_v23 = vpop.permute.xlu1 %1345 }
 0x159   : > { %2416 = vmatprep.mubr.msk.bf16.mxu0 %vm1674_vm15, %v1608_v10  ;;  %v1626_v44 = vsel %vm1598_vm14, %v1593_v20, %v1346_v23 }
 0x15a   : > { %2433 = vmatmul.mubr.msk.bf16.gmra.mxu1 %vm1674_vm15, %v1626_v44 }
 0x15b   : > { %v1042_v49 = vpop.permute.xlu0 %1041 }
 0x15c   : > { %v1060_v33 = vpop.permute.xlu1 %1059  ;;  %v1372_v0 = vsel %vm1351_vm7, %v3303_v27, %v1042_v49  ;;  %v3808_v49 = vld [vmem:[%s3976_s2] ss:$0 sm:$0xff] }
 0x15d   : > { %v1399_v56 = vsel %vm1351_vm7, %v3397_v57, %v1060_v33 }
 0x15f   : > { %v1330_v8 = vpop.permute.xlu0 %1329 }
 0x160   : > { %v1610_v24 = vsel %vm1598_vm14, %v1577_v1, %v1330_v8  ;;  %v1138_v39 = vpop.permute.xlu1 %1137 }
 0x161   : > { %2417 = vmatmul.mubr.msk.bf16.gmra.mxu0 %vm1674_vm15, %v1610_v24  ;;  %v1430_v36 = vsel %vm1400_vm8, %v1396_v51, %v1138_v39 }
 0x163   : > { %v1044_v9 = vpop.permute.xlu0 %1043 }
 0x164   : > { %v1140_v31 = vpop.permute.xlu1 %1139  ;;  %v1375_v62 = vsel %vm1351_vm7, %v3445_v28, %v1044_v9 }
 0x165   : > { %v1432_v14 = vsel %vm1400_vm8, %v1399_v56, %v1140_v31 }
 0x167   : > { %v1122_v15 = vpop.permute.xlu0 %1121 }
 0x168   : > { %v1173_v34 = vpop.permute.xlu1 %1172  ;;  %v1414_v57 = vsel %vm1400_vm8, %v1372_v0, %v1122_v15 }
 0x169   : > { %v1463_v60 = vsel %vm1433_vm9, %v1430_v36, %v1173_v34 }
 0x16b   : > { %v1124_v13 = vpop.permute.xlu0 %1123 }
 0x16c   : > { %v1175_v40 = vpop.permute.xlu1 %1174  ;;  %v1416_v23 = vsel %vm1400_vm8, %v1375_v62, %v1124_v13 }
 0x16d   : > { %v1465_v30 = vsel %vm1433_vm9, %v1432_v14, %v1175_v40 }
 0x16f   : > { %v1157_v18 = vpop.permute.xlu0 %1156 }
 0x170   : > { %v1208_v55 = vpop.permute.xlu1 %1207  ;;  %v1447_v61 = vsel %vm1433_vm9, %v1414_v57, %v1157_v18 }
 0x171   : > { %v1496_v5 = vsel %vm1466_vm10, %v1463_v60, %v1208_v55 }
 0x173   : > { %v1159_v3 = vpop.permute.xlu0 %1158 }
 0x174   : > { %v1210_v6 = vpop.permute.xlu1 %1209  ;;  %v1449_v29 = vsel %vm1433_vm9, %v1416_v23, %v1159_v3 }
 0x175   : > { %v1498_v46 = vsel %vm1466_vm10, %v1465_v30, %v1210_v6 }
 0x177   : > { %v1192_v41 = vpop.permute.xlu0 %1191 }
 0x178   : > { %v1243_v37 = vpop.permute.xlu1 %1242  ;;  %v1480_v4 = vsel %vm1466_vm10, %v1447_v61, %v1192_v41 }
 0x179   : > { %v1529_v59 = vsel %vm1499_vm11, %v1496_v5, %v1243_v37 }
 0x17b   : > { %v1194_v17 = vpop.permute.xlu0 %1193 }
 0x17c   : > { %v1245_v53 = vpop.permute.xlu1 %1244  ;;  %v1482_v11 = vsel %vm1466_vm10, %v1449_v29, %v1194_v17 }
 0x17d   : > { %v1531_v19 = vsel %vm1499_vm11, %v1498_v46, %v1245_v53 }
 0x17f   : > { %v1227_v32 = vpop.permute.xlu0 %1226 }
 0x180   : > { %v1278_v7 = vpop.permute.xlu1 %1277  ;;  %v1513_v20 = vsel %vm1499_vm11, %v1480_v4, %v1227_v32 }
 0x181   : > { %v1562_v54 = vsel %vm1532_vm12, %v1529_v59, %v1278_v7 }
 0x183   : > { %v1229_v26 = vpop.permute.xlu0 %1228 }
 0x184   : > { %v1280_v48 = vpop.permute.xlu1 %1279  ;;  %v1515_v47 = vsel %vm1499_vm11, %v1482_v11, %v1229_v26 }
 0x185   : > { %v1564_v45 = vsel %vm1532_vm12, %v1531_v19, %v1280_v48 }
 0x187   : > { %v1262_v43 = vpop.permute.xlu0 %1261 }
 0x188   : > { %v1313_v42 = vpop.permute.xlu1 %1312  ;;  %v1546_v16 = vsel %vm1532_vm12, %v1513_v20, %v1262_v43 }
 0x189   : > { %v1595_v25 = vsel %vm1565_vm13, %v1562_v54, %v1313_v42 }
 0x18b   : > { %v1264_v12 = vpop.permute.xlu0 %1263 }
 0x18c   : > { %v1315_v2 = vpop.permute.xlu1 %1314  ;;  %v1548_v33 = vsel %vm1532_vm12, %v1515_v47, %v1264_v12 }
 0x18d   : > { %v1597_v27 = vsel %vm1565_vm13, %v1564_v45, %v1315_v2 }
 0x18f   : > { %v1297_v63 = vpop.permute.xlu0 %1296 }
 0x190   : > { %v1348_v50 = vpop.permute.xlu1 %1347  ;;  %v1579_v44 = vsel %vm1565_vm13, %v1546_v16, %v1297_v63 }
 0x191   : > { %v1628_v21 = vsel %vm1598_vm14, %v1595_v25, %v1348_v50 }
 0x192   : > { %2436 = vmatprep.mubr.msk.bf16.mxu1 %vm1674_vm15, %v1628_v21 }
 0x193   : > { %v1299_v52 = vpop.permute.xlu0 %1298 }
 0x194   : > { %v1350_v58 = vpop.permute.xlu1 %1349  ;;  %v1581_v22 = vsel %vm1565_vm13, %v1548_v33, %v1299_v52 }
 0x195   : > { %v1630_v10 = vsel %vm1598_vm14, %v1597_v27, %v1350_v58 }
 0x196   : > { %2437 = vmatmul.mubr.msk.bf16.gmra.mxu1 %vm1674_vm15, %v1630_v10 }
 0x197   : > { %v1332_v35 = vpop.permute.xlu0 %1331 }
 0x198   : > { %v1612_v28 = vsel %vm1598_vm14, %v1579_v44, %v1332_v35 }
 0x199   : > { %2420 = vmatprep.mubr.msk.bf16.mxu0 %vm1674_vm15, %v1612_v28 }
 0x19a   : > { %v2426_v38 = vpop.f32.mrf.mxu1 }
 0x19b   : > { %v1334_v1 = vpop.permute.xlu0 %1333  ;;  %v1818_v8 = vadd.f32 %v2426_v38, %v3808_v49 }
 0x19c   : > { %v1614_v24 = vsel %vm1598_vm14, %v1581_v22, %v1334_v1  ;;  %v1809_v39 = vpop.f32.mrf.mxu1 }
 0x19d   : > { %2421 = vmatmul.mubr.msk.bf16.gmra.mxu0 %vm1674_vm15, %v1614_v24  ;;  %v1890_v9 = vmax.f32 %v1818_v8, 0.0  ;;  %v1810_v31 = vadd.f32 %v3808_v49, %v1809_v39 }
 0x19e   : > { %v2427_v15 = vpop.f32.mrf.mxu1 }
 0x19f   : > { %v2362_v34 = vpack.c.bf16 %v1890_v9, %v1890_v9  ;;  %v1888_v13 = vmax.f32 %v1810_v31, 0.0  ;;  %v1821_v40 = vadd.f32 %v2427_v15, %v3808_v49 }
 0x1a0   : > { %v1812_v18 = vpop.f32.mrf.mxu1 }
 0x1a1   : > { %v2410_v55 = vpop.f32.mrf.mxu0  ;;  %2051 = vst.msk [vmem:[%s3821_s7 + $0x48] sm:$0xf] %vm2032_vm0, %v2362_v34  ;;  %v2360_v3 = vpack.c.bf16 %v1888_v13, %v1888_v13  ;;  %v1891_v6 = vmax.f32 %v1821_v40, 0.0  ;;  %v1813_v41 = vadd.f32 %v3808_v49, %v1812_v18 }
 0x1a2   : > { %v1754_v37 = vadd.f32 %v2410_v55, %v3808_v49 }
 0x1a3   : > { %v1745_v17 = vpop.f32.mrf.mxu0  ;;  %2049 = vst.msk [vmem:[%s3821_s7 + $0x40] sm:$0xf] %vm2032_vm0, %v2360_v3  ;;  %v2363_v53 = vpack.c.bf16 %v1891_v6, %v1891_v6  ;;  %v1889_v32 = vmax.f32 %v1813_v41, 0.0 }
 0x1a4   : > { %v1874_v7 = vmax.f32 %v1754_v37, 0.0  ;;  %v1746_v26 = vadd.f32 %v3808_v49, %v1745_v17 }
 0x1a5   : > { %v2411_v48 = vpop.f32.mrf.mxu0  ;;  %2052 = vst.msk [vmem:[%s3821_s7 + $0x4c] sm:$0xf] %vm2032_vm0, %v2363_v53  ;;  %v2361_v43 = vpack.c.bf16 %v1889_v32, %v1889_v32 }
 0x1a6   : > { %v2346_v42 = vpack.c.bf16 %v1874_v7, %v1874_v7  ;;  %v1872_v51 = vmax.f32 %v1746_v26, 0.0  ;;  %v1757_v36 = vadd.f32 %v2411_v48, %v3808_v49 }
 0x1a7   : > { %v1748_v12 = vpop.f32.mrf.mxu0  ;;  %2050 = vst.msk [vmem:[%s3821_s7 + $0x44] sm:$0xf] %vm2032_vm0, %v2361_v43 }
 0x1a8   : > { %2035 = vst.msk [vmem:[%s3821_s7 + $0x8] sm:$0xf] %vm2032_vm0, %v2346_v42  ;;  %v2344_v60 = vpack.c.bf16 %v1872_v51, %v1872_v51  ;;  %v1875_v2 = vmax.f32 %v1757_v36, 0.0  ;;  %v1749_v5 = vadd.f32 %v3808_v49, %v1748_v12 }
 0x1aa   : > { %2033 = vst.msk [vmem:[%s3821_s7] sm:$0xf] %vm2032_vm0, %v2344_v60  ;;  %v2347_v56 = vpack.c.bf16 %v1875_v2, %v1875_v2  ;;  %v1873_v59 = vmax.f32 %v1749_v5, 0.0 }
 0x1ac   : > { %2036 = vst.msk [vmem:[%s3821_s7 + $0xc] sm:$0xf] %vm2032_vm0, %v2347_v56  ;;  %v2345_v14 = vpack.c.bf16 %v1873_v59, %v1873_v59 }
 0x1ae   : > { %2034 = vst.msk [vmem:[%s3821_s7 + $0x4] sm:$0xf] %vm2032_vm0, %v2345_v14 }
 0x1da   : > { %v2430_v54 = vpop.f32.mrf.mxu1 }
 0x1db   : > { %v1834_v63 = vadd.f32 %v2430_v54, %v3808_v49 }
 0x1dc   : > { %v1825_v30 = vpop.f32.mrf.mxu1 }
 0x1dd   : > { %v1894_v25 = vmax.f32 %v1834_v63, 0.0  ;;  %v1826_v50 = vadd.f32 %v3808_v49, %v1825_v30 }
 0x1de   : > { %v2431_v0 = vpop.f32.mrf.mxu1 }
 0x1df   : > { %v2366_v46 = vpack.c.bf16 %v1894_v25, %v1894_v25  ;;  %v1892_v21 = vmax.f32 %v1826_v50, 0.0  ;;  %v1837_v57 = vadd.f32 %v2431_v0, %v3808_v49 }
 0x1e0   : > { %v1828_v19 = vpop.f32.mrf.mxu1 }
 0x1e1   : > { %v2414_v61 = vpop.f32.mrf.mxu0  ;;  %2055 = vst.msk [vmem:[%s3821_s7 + $0x58] sm:$0xf] %vm2032_vm0, %v2366_v46  ;;  %v2364_v45 = vpack.c.bf16 %v1892_v21, %v1892_v21  ;;  %v1895_v52 = vmax.f32 %v1837_v57, 0.0  ;;  %v1829_v4 = vadd.f32 %v3808_v49, %v1828_v19 }
 0x1e2   : > { %v1770_v27 = vadd.f32 %v2414_v61, %v3808_v49 }
 0x1e3   : > { %v1761_v58 = vpop.f32.mrf.mxu0  ;;  %2053 = vst.msk [vmem:[%s3821_s7 + $0x50] sm:$0xf] %vm2032_vm0, %v2364_v45  ;;  %v2367_v62 = vpack.c.bf16 %v1895_v52, %v1895_v52  ;;  %v1893_v20 = vmax.f32 %v1829_v4, 0.0 }
 0x1e4   : > { %v1878_v10 = vmax.f32 %v1770_v27, 0.0  ;;  %v1762_v23 = vadd.f32 %v3808_v49, %v1761_v58 }
 0x1e5   : > { %v2415_v16 = vpop.f32.mrf.mxu0  ;;  %2056 = vst.msk [vmem:[%s3821_s7 + $0x5c] sm:$0xf] %vm2032_vm0, %v2367_v62  ;;  %v2365_v29 = vpack.c.bf16 %v1893_v20, %v1893_v20 }
 0x1e6   : > { %v2350_v44 = vpack.c.bf16 %v1878_v10, %v1878_v10  ;;  %v1876_v35 = vmax.f32 %v1762_v23, 0.0  ;;  %v1773_v11 = vadd.f32 %v2415_v16, %v3808_v49 }
 0x1e7   : > { %v1764_v28 = vpop.f32.mrf.mxu0  ;;  %2054 = vst.msk [vmem:[%s3821_s7 + $0x54] sm:$0xf] %vm2032_vm0, %v2365_v29 }
 0x1e8   : > { %2039 = vst.msk [vmem:[%s3821_s7 + $0x18] sm:$0xf] %vm2032_vm0, %v2350_v44  ;;  %v2348_v47 = vpack.c.bf16 %v1876_v35, %v1876_v35  ;;  %v1879_v33 = vmax.f32 %v1773_v11, 0.0  ;;  %v1765_v38 = vadd.f32 %v3808_v49, %v1764_v28 }
 0x1ea   : > { %2037 = vst.msk [vmem:[%s3821_s7 + $0x10] sm:$0xf] %vm2032_vm0, %v2348_v47  ;;  %v2351_v22 = vpack.c.bf16 %v1879_v33, %v1879_v33  ;;  %v1877_v1 = vmax.f32 %v1765_v38, 0.0 }
 0x1ec   : > { %2040 = vst.msk [vmem:[%s3821_s7 + $0x1c] sm:$0xf] %vm2032_vm0, %v2351_v22  ;;  %v2349_v8 = vpack.c.bf16 %v1877_v1, %v1877_v1 }
 0x1ee   : > { %2038 = vst.msk [vmem:[%s3821_s7 + $0x14] sm:$0xf] %vm2032_vm0, %v2349_v8 }
 0x21a   : > { %v2434_v24 = vpop.f32.mrf.mxu1 }
 0x21b   : > { %v1850_v39 = vadd.f32 %v2434_v24, %v3808_v49 }
 0x21c   : > { %v1841_v9 = vpop.f32.mrf.mxu1 }
 0x21d   : > { %v1898_v31 = vmax.f32 %v1850_v39, 0.0  ;;  %v1842_v15 = vadd.f32 %v3808_v49, %v1841_v9 }
 0x21e   : > { %v2435_v34 = vpop.f32.mrf.mxu1 }
 0x21f   : > { %v2370_v13 = vpack.c.bf16 %v1898_v31, %v1898_v31  ;;  %v1896_v40 = vmax.f32 %v1842_v15, 0.0  ;;  %v1853_v18 = vadd.f32 %v2435_v34, %v3808_v49 }
 0x220   : > { %v1844_v55 = vpop.f32.mrf.mxu1 }
 0x221   : > { %v2418_v3 = vpop.f32.mrf.mxu0  ;;  %2059 = vst.msk [vmem:[%s3821_s7 + $0x68] sm:$0xf] %vm2032_vm0, %v2370_v13  ;;  %v2368_v6 = vpack.c.bf16 %v1896_v40, %v1896_v40  ;;  %v1899_v41 = vmax.f32 %v1853_v18, 0.0  ;;  %v1845_v37 = vadd.f32 %v3808_v49, %v1844_v55 }
 0x222   : > { %v1786_v17 = vadd.f32 %v2418_v3, %v3808_v49 }
 0x223   : > { %v1777_v53 = vpop.f32.mrf.mxu0  ;;  %2057 = vst.msk [vmem:[%s3821_s7 + $0x60] sm:$0xf] %vm2032_vm0, %v2368_v6  ;;  %v2371_v32 = vpack.c.bf16 %v1899_v41, %v1899_v41  ;;  %v1897_v7 = vmax.f32 %v1845_v37, 0.0 }
 0x224   : > { %v1882_v26 = vmax.f32 %v1786_v17, 0.0  ;;  %v1778_v48 = vadd.f32 %v3808_v49, %v1777_v53 }
 0x225   : > { %v2419_v43 = vpop.f32.mrf.mxu0  ;;  %2060 = vst.msk [vmem:[%s3821_s7 + $0x6c] sm:$0xf] %vm2032_vm0, %v2371_v32  ;;  %v2369_v42 = vpack.c.bf16 %v1897_v7, %v1897_v7 }
 0x226   : > { %v2354_v51 = vpack.c.bf16 %v1882_v26, %v1882_v26  ;;  %v1880_v36 = vmax.f32 %v1778_v48, 0.0  ;;  %v1789_v12 = vadd.f32 %v2419_v43, %v3808_v49 }
 0x227   : > { %v1780_v60 = vpop.f32.mrf.mxu0  ;;  %2058 = vst.msk [vmem:[%s3821_s7 + $0x64] sm:$0xf] %vm2032_vm0, %v2369_v42 }
 0x228   : > { %2043 = vst.msk [vmem:[%s3821_s7 + $0x28] sm:$0xf] %vm2032_vm0, %v2354_v51  ;;  %v2352_v2 = vpack.c.bf16 %v1880_v36, %v1880_v36  ;;  %v1883_v5 = vmax.f32 %v1789_v12, 0.0  ;;  %v1781_v56 = vadd.f32 %v3808_v49, %v1780_v60 }
 0x22a   : > { %2041 = vst.msk [vmem:[%s3821_s7 + $0x20] sm:$0xf] %vm2032_vm0, %v2352_v2  ;;  %v2355_v59 = vpack.c.bf16 %v1883_v5, %v1883_v5  ;;  %v1881_v14 = vmax.f32 %v1781_v56, 0.0 }
 0x22c   : > { %2044 = vst.msk [vmem:[%s3821_s7 + $0x2c] sm:$0xf] %vm2032_vm0, %v2355_v59  ;;  %v2353_v54 = vpack.c.bf16 %v1881_v14, %v1881_v14 }
 0x22e   : > { %2042 = vst.msk [vmem:[%s3821_s7 + $0x24] sm:$0xf] %vm2032_vm0, %v2353_v54 }
 0x256   : > { %v2438_v63 = vpop.f32.mrf.mxu1 }
 0x257   : > { %v1866_v30 = vadd.f32 %v2438_v63, %v3808_v49 }
 0x258   : > { %v1857_v25 = vpop.f32.mrf.mxu1 }
 0x259   : > { %v1902_v50 = vmax.f32 %v1866_v30, 0.0  ;;  %v1858_v0 = vadd.f32 %v3808_v49, %v1857_v25 }
 0x25a   : > { %v2439_v46 = vpop.f32.mrf.mxu1 }
 0x25b   : > { %v2374_v21 = vpack.c.bf16 %v1902_v50, %v1902_v50  ;;  %v1900_v57 = vmax.f32 %v1858_v0, 0.0  ;;  %v1869_v19 = vadd.f32 %v2439_v46, %v3808_v49 }
 0x25c   : > { %v1860_v61 = vpop.f32.mrf.mxu1 }
 0x25d   : > { %v2422_v45 = vpop.f32.mrf.mxu0  ;;  %2063 = vst.msk [vmem:[%s3821_s7 + $0x78] sm:$0xf] %vm2032_vm0, %v2374_v21  ;;  %v2372_v52 = vpack.c.bf16 %v1900_v57, %v1900_v57  ;;  %v1903_v4 = vmax.f32 %v1869_v19, 0.0  ;;  %v1861_v27 = vadd.f32 %v3808_v49, %v1860_v61 }
 0x25e   : > { %v1802_v58 = vadd.f32 %v2422_v45, %v3808_v49 }
 0x25f   : > { %v1793_v62 = vpop.f32.mrf.mxu0  ;;  %2061 = vst.msk [vmem:[%s3821_s7 + $0x70] sm:$0xf] %vm2032_vm0, %v2372_v52  ;;  %v2375_v20 = vpack.c.bf16 %v1903_v4, %v1903_v4  ;;  %v1901_v10 = vmax.f32 %v1861_v27, 0.0 }
 0x260   : > { %v1886_v23 = vmax.f32 %v1802_v58, 0.0  ;;  %v1794_v16 = vadd.f32 %v3808_v49, %v1793_v62 }
 0x261   : > { %v2423_v29 = vpop.f32.mrf.mxu0  ;;  %2064 = vst.msk [vmem:[%s3821_s7 + $0x7c] sm:$0xf] %vm2032_vm0, %v2375_v20  ;;  %v2373_v44 = vpack.c.bf16 %v1901_v10, %v1901_v10 }
 0x262   : > { %v2358_v35 = vpack.c.bf16 %v1886_v23, %v1886_v23  ;;  %v1884_v11 = vmax.f32 %v1794_v16, 0.0  ;;  %v1805_v28 = vadd.f32 %v2423_v29, %v3808_v49 }
 0x263   : > { %v1796_v47 = vpop.f32.mrf.mxu0  ;;  %2062 = vst.msk [vmem:[%s3821_s7 + $0x74] sm:$0xf] %vm2032_vm0, %v2373_v44 }
 0x264   : > { %2047 = vst.msk [vmem:[%s3821_s7 + $0x38] sm:$0xf] %vm2032_vm0, %v2358_v35  ;;  %v2356_v33 = vpack.c.bf16 %v1884_v11, %v1884_v11  ;;  %v1887_v38 = vmax.f32 %v1805_v28, 0.0  ;;  %v1797_v22 = vadd.f32 %v3808_v49, %v1796_v47 }
 0x266   : > { %2045 = vst.msk [vmem:[%s3821_s7 + $0x30] sm:$0xf] %vm2032_vm0, %v2356_v33  ;;  %v2359_v1 = vpack.c.bf16 %v1887_v38, %v1887_v38  ;;  %v1885_v8 = vmax.f32 %v1797_v22, 0.0 }
 0x268   : > { %2048 = vst.msk [vmem:[%s3821_s7 + $0x3c] sm:$0xf] %vm2032_vm0, %v2359_v1  ;;  %v2357_v24 = vpack.c.bf16 %v1885_v8, %v1885_v8 }
 0x26a   : > { %2046 = vst.msk [vmem:[%s3821_s7 + $0x34] sm:$0xf] %vm2032_vm0, %v2357_v24 }
 0x26b   : > { %2553 = shalt.err (!%p2550_p5)
}
 0x26c   : > { %s2554_s18 = scalar_lea.hbm %s3917_s23, 2048  ;;  %s2558_s4 = scalar_lea.hbm %s3977_s3, 4096 }
 0x26d   : > { %p2555_p6 = scmp.ne.s32.totalorder %s3917_s23, %s2554_s18  ;;  %p2559_p10 = scmp.lt.s32.totalorder %s3917_s23, %s3977_s3 }
 0x26e   : > { %p2560_p11 = scmp.lt.s32.totalorder %s2558_s4, %s2554_s18 }
 0x26f   : > { %p2556_p7 = pnand %p2555_p6, %p2688_p4 }
 0x270   : > { %p2561_p12 = por %p2560_p11, %p2559_p10 }
 0x271   : > { %p2557_p9 = pneg %p2556_p7 }
 0x273   : > { %p2562_p13 = pnand %p2561_p12, %p2557_p9 }
 0x275   : > { %2565 = shalt.err (!%p2562_p13)
}
 0x276   : > { %s2627_s7 = smov 4  }
 0x277   : > { %2453 = dma.vmem_to_hbm [thread:$0]  (%p2688_p4), %s3921_s9, 2048, %s3917_s23, %s3927_s15, %s2625_s11, %s2625_s11, %s2627_s7  }
 0x278 PF: > { %p2459_p0 = scmp.ge.s32.totalorder %s2616_s17, 2  ;;  %s2099_s8 = sand.u32 1, %s2596_s12  }
 0x279   : > { %s2100_s10 = scalar_lea.sflag [#allocation3], %s2099_s8 }
 0x27a   : > { %p2456_p1 = pnand %p2459_p0, %p2695_p8 }
 0x27c   : > { %p2457_p2 = pneg %p2456_p1 }
 0x27e   : > { %2591 = dma.done.wait (%p2457_p2), %s2100_s10, 2048  }
 0x27f   : > { %2593 = vsyncadd (%p2457_p2), %s2100_s10, 4294965248  ;;  %s16_s17 = sadd.s32 1, %s2616_s17   ;;  %s4005_s12 = smov %s2600_s13 }
 0x280   : > { %p13_p3 = scmp.ge.s32.totalorder %s16_s17, 4   ;;  %s4006_s13 = smov %s2604_s14 }
 0x281   : > { %s4007_s14 = smov %s2701_s25  ;;  %s4008_s15 = smov %s2612_s16 }
 0x282   : > { %s4009_s16 = smov %s4011_s20  ;;  %15 = sbr.rel (!%p13_p3) target bundleno = 4 (0x4), region = 73 }
 0x287   :  { %2105 = vsyncpa [#allocation3], 1 }
 0x288   :  { %2107 = vsyncpa [#allocation3 + $0x1], 1 }

</bundles_post_ra>
